<compile_context>
chip_gen: v7x
topology: tpu7x:2x2x1
jax: 0.10.0
libtpu: 0.0.40
codegen_flags: <defaults>
</compile_context>

<pallas_src>
import functools
import numpy as np
import jax
import jax.numpy as jnp
from jax.experimental import pallas as pl
from jax.experimental.pallas import tpu as pltpu

# ---- model hyper-params (small, consistent with the module's __init__) ----
B = 2          # batch
N = 8          # sequence length (tokens)
DIM = 32       # embedding dim
DEPTH = 2      # number of transformer blocks
HEADS = 4
DIM_HEAD = 8
INNER = HEADS * DIM_HEAD        # 32
MLP_DIM = 64
SCALE = DIM_HEAD ** -0.5
LN_EPS = 1e-5

assert N & (N - 1) == 0, "block-diagonal mask below uses a power-of-two trick for N"


def _layer_norm(x, g, b):
    # PyTorch LayerNorm: biased variance, eps inside sqrt.
    mean = jnp.mean(x, axis=-1, keepdims=True)
    var = jnp.mean((x - mean) ** 2, axis=-1, keepdims=True)
    return (x - mean) * jax.lax.rsqrt(var + LN_EPS) * g[None, :] + b[None, :]


def transformer_kernel(x_ref,
                       ln1_g_ref, ln1_b_ref, wq_ref, wk_ref, wv_ref, wo_ref, out_b_ref,
                       ln2_g_ref, ln2_b_ref, w1_ref, b1_ref, w2_ref, b2_ref,
                       lnf_g_ref, lnf_b_ref,
                       o_ref):
    M = x_ref.shape[0]            # batch_block * N tokens in this slab (static)
    x = x_ref[...]                # (M, DIM) float32

    # Block-diagonal additive attention bias so tokens only attend within their
    # own batch element when several batch elements share one slab (M > N).
    if M > N:
        row_ids = jax.lax.broadcasted_iota(jnp.int32, (M, M), 0)
        col_ids = jax.lax.broadcasted_iota(jnp.int32, (M, M), 1)
        same = jnp.bitwise_and(row_ids, -N) == jnp.bitwise_and(col_ids, -N)  # floor(r/N)==floor(c/N)
        attn_bias = jnp.where(same, 0.0, -1e30).astype(jnp.float32)          # (M, M)
    else:
        attn_bias = None

    for i in range(DEPTH):  # depth is static -> unrolled
        # ---------------- PreNorm + SimpleAttention (heads batched) ----------------
        h = _layer_norm(x, ln1_g_ref[i], ln1_b_ref[i])                        # (M, DIM)
        hb = jnp.broadcast_to(h[None], (HEADS, M, DIM))                       # (H, M, DIM)

        q = jnp.einsum('hmd,hde->hme', hb, wq_ref[i],
                       preferred_element_type=jnp.float32)                    # (H, M, DH)
        k = jnp.einsum('hmd,hde->hme', hb, wk_ref[i],
                       preferred_element_type=jnp.float32)
        v = jnp.einsum('hmd,hde->hme', hb, wv_ref[i],
                       preferred_element_type=jnp.float32)

        dots = jnp.einsum('hqe,hke->hqk', q, k,
                          preferred_element_type=jnp.float32) * SCALE         # (H, M, M)
        if attn_bias is not None:
            dots = dots + attn_bias[None]

        m = jnp.max(dots, axis=-1, keepdims=True)
        e = jnp.exp(dots - m)
        attn = e * pl.reciprocal(jnp.sum(e, axis=-1, keepdims=True), approx=True)

        ctx = jnp.einsum('hqk,hke->hqe', attn, v,
                         preferred_element_type=jnp.float32)                  # (H, M, DH)
        proj = jnp.einsum('hme,hed->hmd', ctx, wo_ref[i],
                          preferred_element_type=jnp.float32)                 # (H, M, DIM)
        proj = jnp.sum(proj, axis=0) + out_b_ref[i][None, :]                  # (M, DIM)
        x = x + proj

        # ---------------- PreNorm + FeedForward (tanh) ----------------
        h2 = _layer_norm(x, ln2_g_ref[i], ln2_b_ref[i])
        h2 = jnp.tanh(jnp.dot(h2, w1_ref[i], preferred_element_type=jnp.float32)
                      + b1_ref[i][None, :])
        h2 = jnp.dot(h2, w2_ref[i], preferred_element_type=jnp.float32) + b2_ref[i][None, :]
        x = x + h2

    # ---------------- final LayerNorm ----------------
    o_ref[...] = _layer_norm(x, lnf_g_ref[0], lnf_b_ref[0])


def _full_spec(shape):
    zeros = (0,) * len(shape)
    return pl.BlockSpec(shape, lambda *_g, _z=zeros: _z)


def _prep_attention_weights(qkv_w, out_w):
    # qkv_w: (DEPTH, DIM, 3*INNER) with columns [q | k | v], each head-major.
    # Pre-permute (outside the kernel) to head-major batched layouts so the
    # kernel never has to lane-slice or transpose per head.
    def split(wslice):  # (DEPTH, DIM, INNER) -> (DEPTH, HEADS, DIM, DIM_HEAD)
        return wslice.reshape(DEPTH, DIM, HEADS, DIM_HEAD).transpose(0, 2, 1, 3)

    wq = split(qkv_w[:, :, 0 * INNER:1 * INNER])
    wk = split(qkv_w[:, :, 1 * INNER:2 * INNER])
    wv = split(qkv_w[:, :, 2 * INNER:3 * INNER])
    wo = out_w.reshape(DEPTH, HEADS, DIM_HEAD, DIM)     # rows of out_w are head-major
    return wq, wk, wv, wo


def _default_batch_block():
    # v7x has 2 TensorCores/chip: keep one batch element per grid step so the
    # "parallel" batch axis shards across cores. Single-TC chips (v5e/v6e, or
    # unknown): collapse the batch grid into a single invocation.
    try:
        kind = jax.devices()[0].device_kind.lower()
    except Exception:
        kind = ""
    return 1 if "v7" in kind else B


@functools.partial(jax.jit, static_argnums=(2,))
def _transformer_pallas_impl(x, params, batch_block):
    (ln1_g, ln1_b, qkv_w, out_w, out_b,
     ln2_g, ln2_b, w1, b1, w2, b2, lnf_g, lnf_b) = params
    wq, wk, wv, wo = _prep_attention_weights(qkv_w, out_w)
    weight_args = (ln1_g, ln1_b, wq, wk, wv, wo, out_b,
                   ln2_g, ln2_b, w1, b1, w2, b2, lnf_g, lnf_b)

    rows = batch_block * N
    grid = (B // batch_block,)

    # Token slab as (B*N, DIM): one (rows, DIM) block per grid step.
    x2 = x.reshape(B * N, DIM)

    in_specs = [pl.BlockSpec((rows, DIM), lambda g: (g, 0))]
    in_specs += [_full_spec(w.shape) for w in weight_args]

    out = pl.pallas_call(
        transformer_kernel,
        out_shape=jax.ShapeDtypeStruct((B * N, DIM), jnp.float32),
        grid_spec=pltpu.PrefetchScalarGridSpec(
            num_scalar_prefetch=0,
            grid=grid,
            in_specs=in_specs,
            out_specs=pl.BlockSpec((rows, DIM), lambda g: (g, 0)),
        ),
        compiler_params=pltpu.CompilerParams(
            dimension_semantics=("parallel",)),
    )(x2, *weight_args)
    return out.reshape(B, N, DIM)


def transformer_pallas(x, params, batch_block=None):
    if batch_block is None:
        batch_block = _default_batch_block()
    return _transformer_pallas_impl(x, params, int(batch_block))


# ---------------- pure-JAX reference (for correctness check) ----------------
def transformer_ref(x, params):
    (ln1_g, ln1_b, qkv_w, out_w, out_b,
     ln2_g, ln2_b, w1, b1, w2, b2, lnf_g, lnf_b) = params

    def ln(v, g, bb):
        mean = jnp.mean(v, axis=-1, keepdims=True)
        var = jnp.mean((v - mean) ** 2, axis=-1, keepdims=True)
        return (v - mean) / jnp.sqrt(var + LN_EPS) * g + bb

    hp = jax.lax.Precision.HIGHEST
    for i in range(DEPTH):
        h = ln(x, ln1_g[i], ln1_b[i])
        qkv = jnp.einsum('bnd,de->bne', h, qkv_w[i], precision=hp)
        q, k, v = jnp.split(qkv, 3, axis=-1)
        q = q.reshape(B, N, HEADS, DIM_HEAD).transpose(0, 2, 1, 3)
        k = k.reshape(B, N, HEADS, DIM_HEAD).transpose(0, 2, 1, 3)
        v = v.reshape(B, N, HEADS, DIM_HEAD).transpose(0, 2, 1, 3)
        dots = jnp.einsum('bhqd,bhkd->bhqk', q, k, precision=hp) * SCALE
        attn = jax.nn.softmax(dots, axis=-1)
        out = jnp.einsum('bhqk,bhkd->bhqd', attn, v, precision=hp)
        out = out.transpose(0, 2, 1, 3).reshape(B, N, INNER)
        out = jnp.einsum('bne,ed->bnd', out, out_w[i], precision=hp) + out_b[i]
        x = x + out

        h2 = ln(x, ln2_g[i], ln2_b[i])
        h2 = jnp.tanh(jnp.einsum('bnd,dm->bnm', h2, w1[i], precision=hp) + b1[i])
        h2 = jnp.einsum('bnm,md->bnd', h2, w2[i], precision=hp) + b2[i]
        x = x + h2
    return ln(x, lnf_g[0], lnf_b[0])


def make_params(key):
    ks = jax.random.split(key, 8)
    s = 0.02
    ln1_g = jnp.ones((DEPTH, DIM), jnp.float32)
    ln1_b = jnp.zeros((DEPTH, DIM), jnp.float32)
    qkv_w = s * jax.random.normal(ks[0], (DEPTH, DIM, 3 * INNER), jnp.float32)
    out_w = s * jax.random.normal(ks[1], (DEPTH, INNER, DIM), jnp.float32)
    out_b = s * jax.random.normal(ks[2], (DEPTH, DIM), jnp.float32)
    ln2_g = jnp.ones((DEPTH, DIM), jnp.float32)
    ln2_b = jnp.zeros((DEPTH, DIM), jnp.float32)
    w1 = s * jax.random.normal(ks[3], (DEPTH, DIM, MLP_DIM), jnp.float32)
    b1 = s * jax.random.normal(ks[4], (DEPTH, MLP_DIM), jnp.float32)
    w2 = s * jax.random.normal(ks[5], (DEPTH, MLP_DIM, DIM), jnp.float32)
    b2 = s * jax.random.normal(ks[6], (DEPTH, DIM), jnp.float32)
    lnf_g = jnp.ones((1, DIM), jnp.float32)
    lnf_b = jnp.zeros((1, DIM), jnp.float32)
    return (ln1_g, ln1_b, qkv_w, out_w, out_b,
            ln2_g, ln2_b, w1, b1, w2, b2, lnf_g, lnf_b)


if __name__ == "__main__":
    key = jax.random.PRNGKey(0)
    kx, kp = jax.random.split(key)
    x = jax.random.normal(kx, (B, N, DIM), jnp.float32)
    params = make_params(kp)

    out = transformer_pallas(x, params)
    out = jax.block_until_ready(out)

    ref = transformer_ref(x, params)
    np.testing.assert_allclose(np.asarray(out), np.asarray(ref), atol=1e-2, rtol=1e-2)
    assert out.shape == (B, N, DIM)
    print("KERNEL_OK")
</pallas_src>

<mosaic_0001>
module attributes {stable_mosaic.version = 11 : i64} {
  func.func @transformer_kernel(%arg0: i32, %arg1: memref<16x32xf32, #tpu.memory_space<vmem>>, %arg2: memref<2x32xf32, #tpu.memory_space<vmem>>, %arg3: memref<2x32xf32, #tpu.memory_space<vmem>>, %arg4: memref<2x4x32x8xf32, #tpu.memory_space<vmem>>, %arg5: memref<2x4x32x8xf32, #tpu.memory_space<vmem>>, %arg6: memref<2x4x32x8xf32, #tpu.memory_space<vmem>>, %arg7: memref<2x4x8x32xf32, #tpu.memory_space<vmem>>, %arg8: memref<2x32xf32, #tpu.memory_space<vmem>>, %arg9: memref<2x32xf32, #tpu.memory_space<vmem>>, %arg10: memref<2x32xf32, #tpu.memory_space<vmem>>, %arg11: memref<2x32x64xf32, #tpu.memory_space<vmem>>, %arg12: memref<2x64xf32, #tpu.memory_space<vmem>>, %arg13: memref<2x64x32xf32, #tpu.memory_space<vmem>>, %arg14: memref<2x32xf32, #tpu.memory_space<vmem>>, %arg15: memref<1x32xf32, #tpu.memory_space<vmem>>, %arg16: memref<1x32xf32, #tpu.memory_space<vmem>>, %arg17: memref<16x32xf32, #tpu.memory_space<vmem>>) attributes {dimension_semantics = [#tpu.dimension_semantics<parallel>], iteration_bounds = array<i64: 1>, scalar_prefetch = 0 : i64, scratch_operands = 0 : i64, tpu.core_type = #tpu.core_type<tc>, window_params = [{transform_indices = @transform_0, window_bounds = array<i64: 16, 32>}, {pipeline_mode = #tpu.pipeline_mode<synchronous>, transform_indices = @transform_1, window_bounds = array<i64: 2, 32>}, {pipeline_mode = #tpu.pipeline_mode<synchronous>, transform_indices = @transform_2, window_bounds = array<i64: 2, 32>}, {pipeline_mode = #tpu.pipeline_mode<synchronous>, transform_indices = @transform_3, window_bounds = array<i64: 2, 4, 32, 8>}, {pipeline_mode = #tpu.pipeline_mode<synchronous>, transform_indices = @transform_4, window_bounds = array<i64: 2, 4, 32, 8>}, {pipeline_mode = #tpu.pipeline_mode<synchronous>, transform_indices = @transform_5, window_bounds = array<i64: 2, 4, 32, 8>}, {pipeline_mode = #tpu.pipeline_mode<synchronous>, transform_indices = @transform_6, window_bounds = array<i64: 2, 4, 8, 32>}, {pipeline_mode = #tpu.pipeline_mode<synchronous>, transform_indices = @transform_7, window_bounds = array<i64: 2, 32>}, {pipeline_mode = #tpu.pipeline_mode<synchronous>, transform_indices = @transform_8, window_bounds = array<i64: 2, 32>}, {pipeline_mode = #tpu.pipeline_mode<synchronous>, transform_indices = @transform_9, window_bounds = array<i64: 2, 32>}, {pipeline_mode = #tpu.pipeline_mode<synchronous>, transform_indices = @transform_10, window_bounds = array<i64: 2, 32, 64>}, {pipeline_mode = #tpu.pipeline_mode<synchronous>, transform_indices = @transform_11, window_bounds = array<i64: 2, 64>}, {pipeline_mode = #tpu.pipeline_mode<synchronous>, transform_indices = @transform_12, window_bounds = array<i64: 2, 64, 32>}, {pipeline_mode = #tpu.pipeline_mode<synchronous>, transform_indices = @transform_13, window_bounds = array<i64: 2, 32>}, {pipeline_mode = #tpu.pipeline_mode<synchronous>, transform_indices = @transform_14, window_bounds = array<i64: 1, 32>}, {pipeline_mode = #tpu.pipeline_mode<synchronous>, transform_indices = @transform_15, window_bounds = array<i64: 1, 32>}, {transform_indices = @transform_16, window_bounds = array<i64: 16, 32>}]} {
    %c0 = arith.constant 0 : index
    %c0_0 = arith.constant 0 : index
    %0 = vector.load %arg1[%c0, %c0_0] : memref<16x32xf32, #tpu.memory_space<vmem>>, vector<16x32xf32>
    %1 = tpu.iota {dimensions = array<i32: 0>} : vector<16x16xi32>
    %2 = tpu.iota {dimensions = array<i32: 1>} : vector<16x16xi32>
    %c-8_i32 = arith.constant -8 : i32
    %3 = vector.broadcast %c-8_i32 : i32 to vector<16x16xi32>
    %4 = arith.andi %1, %3 : vector<16x16xi32>
    %c-8_i32_1 = arith.constant -8 : i32
    %5 = vector.broadcast %c-8_i32_1 : i32 to vector<16x16xi32>
    %6 = arith.andi %2, %5 : vector<16x16xi32>
    %7 = arith.cmpi eq, %4, %6 : vector<16x16xi32>
    %cst = arith.constant 0.000000e+00 : f32
    %cst_2 = arith.constant -1.000000e+30 : f32
    %8 = vector.broadcast %cst : f32 to vector<16x16xf32>
    %9 = vector.broadcast %cst_2 : f32 to vector<16x16xf32>
    %10 = arith.select %7, %8, %9 : vector<16x16xi1>, vector<16x16xf32>
    %c0_3 = arith.constant 0 : index
    %c0_4 = arith.constant 0 : index
    %11 = vector.load %arg2[%c0_3, %c0_4] : memref<2x32xf32, #tpu.memory_space<vmem>>, vector<1x32xf32>
    %12 = vector.shape_cast %11 : vector<1x32xf32> to vector<32xf32>
    %c0_5 = arith.constant 0 : index
    %c0_6 = arith.constant 0 : index
    %13 = vector.load %arg3[%c0_5, %c0_6] : memref<2x32xf32, #tpu.memory_space<vmem>>, vector<1x32xf32>
    %14 = vector.shape_cast %13 : vector<1x32xf32> to vector<32xf32>
    %cst_7 = arith.constant dense<0.000000e+00> : vector<16xf32>
    %15 = vector.multi_reduction <add>, %0, %cst_7 [1] : vector<16x32xf32> to vector<16xf32>
    %16 = vector.shape_cast %15 : vector<16xf32> to vector<16x1xf32>
    %cst_8 = arith.constant 3.200000e+01 : f32
    %17 = vector.broadcast %cst_8 : f32 to vector<16x1xf32>
    %18 = arith.divf %16, %17 : vector<16x1xf32>
    %19 = vector.broadcast %18 : vector<16x1xf32> to vector<16x32xf32>
    %20 = arith.subf %0, %19 : vector<16x32xf32>
    %21 = arith.mulf %20, %20 : vector<16x32xf32>
    %cst_9 = arith.constant dense<0.000000e+00> : vector<16xf32>
    %22 = vector.multi_reduction <add>, %21, %cst_9 [1] : vector<16x32xf32> to vector<16xf32>
    %23 = vector.shape_cast %22 : vector<16xf32> to vector<16x1xf32>
    %cst_10 = arith.constant 3.200000e+01 : f32
    %24 = vector.broadcast %cst_10 : f32 to vector<16x1xf32>
    %25 = arith.divf %23, %24 : vector<16x1xf32>
    %26 = vector.broadcast %18 : vector<16x1xf32> to vector<16x32xf32>
    %27 = arith.subf %0, %26 : vector<16x32xf32>
    %cst_11 = arith.constant 9.99999974E-6 : f32
    %28 = vector.broadcast %cst_11 : f32 to vector<16x1xf32>
    %29 = arith.addf %25, %28 : vector<16x1xf32>
    %30 = math.rsqrt %29 : vector<16x1xf32>
    %31 = vector.broadcast %30 : vector<16x1xf32> to vector<16x32xf32>
    %32 = arith.mulf %27, %31 : vector<16x32xf32>
    %33 = vector.shape_cast %12 : vector<32xf32> to vector<1x32xf32>
    %34 = vector.broadcast %33 : vector<1x32xf32> to vector<16x32xf32>
    %35 = arith.mulf %32, %34 : vector<16x32xf32>
    %36 = vector.shape_cast %14 : vector<32xf32> to vector<1x32xf32>
    %37 = vector.broadcast %36 : vector<1x32xf32> to vector<16x32xf32>
    %38 = arith.addf %35, %37 : vector<16x32xf32>
    %39 = vector.shape_cast %38 : vector<16x32xf32> to vector<1x16x32xf32>
    %40 = vector.shape_cast %39 : vector<1x16x32xf32> to vector<1x16x32xf32>
    %41 = vector.broadcast %40 : vector<1x16x32xf32> to vector<4x16x32xf32>
    %c0_12 = arith.constant 0 : index
    %c0_13 = arith.constant 0 : index
    %c0_14 = arith.constant 0 : index
    %c0_15 = arith.constant 0 : index
    %42 = vector.load %arg4[%c0_12, %c0_13, %c0_14, %c0_15] : memref<2x4x32x8xf32, #tpu.memory_space<vmem>>, vector<1x4x32x8xf32>
    %43 = vector.shape_cast %42 : vector<1x4x32x8xf32> to vector<4x32x8xf32>
    "tpu.trace_start"() <{level = 10 : i32, message = "hmd,hde->hme"}> : () -> ()
    %cst_16 = arith.constant dense<0.000000e+00> : vector<4x16x8xf32>
    %44 = tpu.matmul %41, %43, %cst_16 {dimension_numbers = #tpu.dot_dimension_numbers<[2], [1], [1], [2], [0, 0, 0, 1, 1, 2], [0], [0]>} : vector<4x16x32xf32>, vector<4x32x8xf32>, vector<4x16x8xf32> -> vector<4x16x8xf32>
    "tpu.trace_stop"() : () -> ()
    %c0_17 = arith.constant 0 : index
    %c0_18 = arith.constant 0 : index
    %c0_19 = arith.constant 0 : index
    %c0_20 = arith.constant 0 : index
    %45 = vector.load %arg5[%c0_17, %c0_18, %c0_19, %c0_20] : memref<2x4x32x8xf32, #tpu.memory_space<vmem>>, vector<1x4x32x8xf32>
    %46 = vector.shape_cast %45 : vector<1x4x32x8xf32> to vector<4x32x8xf32>
    "tpu.trace_start"() <{level = 10 : i32, message = "hmd,hde->hme"}> : () -> ()
    %cst_21 = arith.constant dense<0.000000e+00> : vector<4x16x8xf32>
    %47 = tpu.matmul %41, %46, %cst_21 {dimension_numbers = #tpu.dot_dimension_numbers<[2], [1], [1], [2], [0, 0, 0, 1, 1, 2], [0], [0]>} : vector<4x16x32xf32>, vector<4x32x8xf32>, vector<4x16x8xf32> -> vector<4x16x8xf32>
    "tpu.trace_stop"() : () -> ()
    %c0_22 = arith.constant 0 : index
    %c0_23 = arith.constant 0 : index
    %c0_24 = arith.constant 0 : index
    %c0_25 = arith.constant 0 : index
    %48 = vector.load %arg6[%c0_22, %c0_23, %c0_24, %c0_25] : memref<2x4x32x8xf32, #tpu.memory_space<vmem>>, vector<1x4x32x8xf32>
    %49 = vector.shape_cast %48 : vector<1x4x32x8xf32> to vector<4x32x8xf32>
    "tpu.trace_start"() <{level = 10 : i32, message = "hmd,hde->hme"}> : () -> ()
    %cst_26 = arith.constant dense<0.000000e+00> : vector<4x16x8xf32>
    %50 = tpu.matmul %41, %49, %cst_26 {dimension_numbers = #tpu.dot_dimension_numbers<[2], [1], [1], [2], [0, 0, 0, 1, 1, 2], [0], [0]>} : vector<4x16x32xf32>, vector<4x32x8xf32>, vector<4x16x8xf32> -> vector<4x16x8xf32>
    "tpu.trace_stop"() : () -> ()
    "tpu.trace_start"() <{level = 10 : i32, message = "hqe,hke->hqk"}> : () -> ()
    %cst_27 = arith.constant dense<0.000000e+00> : vector<4x16x16xf32>
    %51 = tpu.matmul %44, %47, %cst_27 {dimension_numbers = #tpu.dot_dimension_numbers<[2], [2], [1], [1], [0, 0, 0, 1, 1, 1], [0], [0]>} : vector<4x16x8xf32>, vector<4x16x8xf32>, vector<4x16x16xf32> -> vector<4x16x16xf32>
    "tpu.trace_stop"() : () -> ()
    %cst_28 = arith.constant 0.353553385 : f32
    %52 = vector.broadcast %cst_28 : f32 to vector<4x16x16xf32>
    %53 = arith.mulf %51, %52 : vector<4x16x16xf32>
    %54 = vector.shape_cast %10 : vector<16x16xf32> to vector<1x16x16xf32>
    %55 = vector.broadcast %54 : vector<1x16x16xf32> to vector<4x16x16xf32>
    %56 = arith.addf %53, %55 : vector<4x16x16xf32>
    %cst_29 = arith.constant dense<0xFF800000> : vector<4x16xf32>
    %57 = vector.multi_reduction <maximumf>, %56, %cst_29 [2] : vector<4x16x16xf32> to vector<4x16xf32>
    %58 = vector.shape_cast %57 : vector<4x16xf32> to vector<4x16x1xf32>
    %59 = vector.broadcast %58 : vector<4x16x1xf32> to vector<4x16x16xf32>
    %60 = arith.subf %56, %59 : vector<4x16x16xf32>
    %61 = math.exp %60 : vector<4x16x16xf32>
    %cst_30 = arith.constant dense<0.000000e+00> : vector<4x16xf32>
    %62 = vector.multi_reduction <add>, %61, %cst_30 [2] : vector<4x16x16xf32> to vector<4x16xf32>
    %63 = vector.shape_cast %62 : vector<4x16xf32> to vector<4x16x1xf32>
    %64 = tpu.reciprocal %63 {approx = true} : vector<4x16x1xf32> -> vector<4x16x1xf32>
    %65 = vector.broadcast %64 : vector<4x16x1xf32> to vector<4x16x16xf32>
    %66 = arith.mulf %61, %65 : vector<4x16x16xf32>
    "tpu.trace_start"() <{level = 10 : i32, message = "hqk,hke->hqe"}> : () -> ()
    %cst_31 = arith.constant dense<0.000000e+00> : vector<4x16x8xf32>
    %67 = tpu.matmul %66, %50, %cst_31 {dimension_numbers = #tpu.dot_dimension_numbers<[2], [1], [1], [2], [0, 0, 0, 1, 1, 2], [0], [0]>} : vector<4x16x16xf32>, vector<4x16x8xf32>, vector<4x16x8xf32> -> vector<4x16x8xf32>
    "tpu.trace_stop"() : () -> ()
    %c0_32 = arith.constant 0 : index
    %c0_33 = arith.constant 0 : index
    %c0_34 = arith.constant 0 : index
    %c0_35 = arith.constant 0 : index
    %68 = vector.load %arg7[%c0_32, %c0_33, %c0_34, %c0_35] : memref<2x4x8x32xf32, #tpu.memory_space<vmem>>, vector<1x4x8x32xf32>
    %69 = vector.shape_cast %68 : vector<1x4x8x32xf32> to vector<4x8x32xf32>
    "tpu.trace_start"() <{level = 10 : i32, message = "hme,hed->hmd"}> : () -> ()
    %cst_36 = arith.constant dense<0.000000e+00> : vector<4x16x32xf32>
    %70 = tpu.matmul %67, %69, %cst_36 {dimension_numbers = #tpu.dot_dimension_numbers<[2], [1], [1], [2], [0, 0, 0, 1, 1, 2], [0], [0]>} : vector<4x16x8xf32>, vector<4x8x32xf32>, vector<4x16x32xf32> -> vector<4x16x32xf32>
    "tpu.trace_stop"() : () -> ()
    %cst_37 = arith.constant dense<0.000000e+00> : vector<16x32xf32>
    %71 = vector.multi_reduction <add>, %70, %cst_37 [0] : vector<4x16x32xf32> to vector<16x32xf32>
    %c0_38 = arith.constant 0 : index
    %c0_39 = arith.constant 0 : index
    %72 = vector.load %arg8[%c0_38, %c0_39] : memref<2x32xf32, #tpu.memory_space<vmem>>, vector<1x32xf32>
    %73 = vector.shape_cast %72 : vector<1x32xf32> to vector<32xf32>
    %74 = vector.shape_cast %73 : vector<32xf32> to vector<1x32xf32>
    %75 = vector.broadcast %74 : vector<1x32xf32> to vector<16x32xf32>
    %76 = arith.addf %71, %75 : vector<16x32xf32>
    %77 = arith.addf %0, %76 : vector<16x32xf32>
    %c0_40 = arith.constant 0 : index
    %c0_41 = arith.constant 0 : index
    %78 = vector.load %arg9[%c0_40, %c0_41] : memref<2x32xf32, #tpu.memory_space<vmem>>, vector<1x32xf32>
    %79 = vector.shape_cast %78 : vector<1x32xf32> to vector<32xf32>
    %c0_42 = arith.constant 0 : index
    %c0_43 = arith.constant 0 : index
    %80 = vector.load %arg10[%c0_42, %c0_43] : memref<2x32xf32, #tpu.memory_space<vmem>>, vector<1x32xf32>
    %81 = vector.shape_cast %80 : vector<1x32xf32> to vector<32xf32>
    %cst_44 = arith.constant dense<0.000000e+00> : vector<16xf32>
    %82 = vector.multi_reduction <add>, %77, %cst_44 [1] : vector<16x32xf32> to vector<16xf32>
    %83 = vector.shape_cast %82 : vector<16xf32> to vector<16x1xf32>
    %cst_45 = arith.constant 3.200000e+01 : f32
    %84 = vector.broadcast %cst_45 : f32 to vector<16x1xf32>
    %85 = arith.divf %83, %84 : vector<16x1xf32>
    %86 = vector.broadcast %85 : vector<16x1xf32> to vector<16x32xf32>
    %87 = arith.subf %77, %86 : vector<16x32xf32>
    %88 = arith.mulf %87, %87 : vector<16x32xf32>
    %cst_46 = arith.constant dense<0.000000e+00> : vector<16xf32>
    %89 = vector.multi_reduction <add>, %88, %cst_46 [1] : vector<16x32xf32> to vector<16xf32>
    %90 = vector.shape_cast %89 : vector<16xf32> to vector<16x1xf32>
    %cst_47 = arith.constant 3.200000e+01 : f32
    %91 = vector.broadcast %cst_47 : f32 to vector<16x1xf32>
    %92 = arith.divf %90, %91 : vector<16x1xf32>
    %93 = vector.broadcast %85 : vector<16x1xf32> to vector<16x32xf32>
    %94 = arith.subf %77, %93 : vector<16x32xf32>
    %cst_48 = arith.constant 9.99999974E-6 : f32
    %95 = vector.broadcast %cst_48 : f32 to vector<16x1xf32>
    %96 = arith.addf %92, %95 : vector<16x1xf32>
    %97 = math.rsqrt %96 : vector<16x1xf32>
    %98 = vector.broadcast %97 : vector<16x1xf32> to vector<16x32xf32>
    %99 = arith.mulf %94, %98 : vector<16x32xf32>
    %100 = vector.shape_cast %79 : vector<32xf32> to vector<1x32xf32>
    %101 = vector.broadcast %100 : vector<1x32xf32> to vector<16x32xf32>
    %102 = arith.mulf %99, %101 : vector<16x32xf32>
    %103 = vector.shape_cast %81 : vector<32xf32> to vector<1x32xf32>
    %104 = vector.broadcast %103 : vector<1x32xf32> to vector<16x32xf32>
    %105 = arith.addf %102, %104 : vector<16x32xf32>
    %c0_49 = arith.constant 0 : index
    %c0_50 = arith.constant 0 : index
    %c0_51 = arith.constant 0 : index
    %106 = vector.load %arg11[%c0_49, %c0_50, %c0_51] : memref<2x32x64xf32, #tpu.memory_space<vmem>>, vector<1x32x64xf32>
    %107 = vector.shape_cast %106 : vector<1x32x64xf32> to vector<32x64xf32>
    %cst_52 = arith.constant dense<0.000000e+00> : vector<16x64xf32>
    %108 = tpu.matmul %105, %107, %cst_52 {dimension_numbers = #tpu.dot_dimension_numbers<[1], [0], [0], [1], [0, 0, 1, 1], [], []>} : vector<16x32xf32>, vector<32x64xf32>, vector<16x64xf32> -> vector<16x64xf32>
    %c0_53 = arith.constant 0 : index
    %c0_54 = arith.constant 0 : index
    %109 = vector.load %arg12[%c0_53, %c0_54] : memref<2x64xf32, #tpu.memory_space<vmem>>, vector<1x64xf32>
    %110 = vector.shape_cast %109 : vector<1x64xf32> to vector<64xf32>
    %111 = vector.shape_cast %110 : vector<64xf32> to vector<1x64xf32>
    %112 = vector.broadcast %111 : vector<1x64xf32> to vector<16x64xf32>
    %113 = arith.addf %108, %112 : vector<16x64xf32>
    %114 = math.tanh %113 : vector<16x64xf32>
    %c0_55 = arith.constant 0 : index
    %c0_56 = arith.constant 0 : index
    %c0_57 = arith.constant 0 : index
    %115 = vector.load %arg13[%c0_55, %c0_56, %c0_57] : memref<2x64x32xf32, #tpu.memory_space<vmem>>, vector<1x64x32xf32>
    %116 = vector.shape_cast %115 : vector<1x64x32xf32> to vector<64x32xf32>
    %cst_58 = arith.constant dense<0.000000e+00> : vector<16x32xf32>
    %117 = tpu.matmul %114, %116, %cst_58 {dimension_numbers = #tpu.dot_dimension_numbers<[1], [0], [0], [1], [0, 0, 1, 1], [], []>} : vector<16x64xf32>, vector<64x32xf32>, vector<16x32xf32> -> vector<16x32xf32>
    %c0_59 = arith.constant 0 : index
    %c0_60 = arith.constant 0 : index
    %118 = vector.load %arg14[%c0_59, %c0_60] : memref<2x32xf32, #tpu.memory_space<vmem>>, vector<1x32xf32>
    %119 = vector.shape_cast %118 : vector<1x32xf32> to vector<32xf32>
    %120 = vector.shape_cast %119 : vector<32xf32> to vector<1x32xf32>
    %121 = vector.broadcast %120 : vector<1x32xf32> to vector<16x32xf32>
    %122 = arith.addf %117, %121 : vector<16x32xf32>
    %123 = arith.addf %77, %122 : vector<16x32xf32>
    %c1 = arith.constant 1 : index
    %c0_61 = arith.constant 0 : index
    %124 = vector.load %arg2[%c1, %c0_61] : memref<2x32xf32, #tpu.memory_space<vmem>>, vector<1x32xf32>
    %125 = vector.shape_cast %124 : vector<1x32xf32> to vector<32xf32>
    %c1_62 = arith.constant 1 : index
    %c0_63 = arith.constant 0 : index
    %126 = vector.load %arg3[%c1_62, %c0_63] : memref<2x32xf32, #tpu.memory_space<vmem>>, vector<1x32xf32>
    %127 = vector.shape_cast %126 : vector<1x32xf32> to vector<32xf32>
    %cst_64 = arith.constant dense<0.000000e+00> : vector<16xf32>
    %128 = vector.multi_reduction <add>, %123, %cst_64 [1] : vector<16x32xf32> to vector<16xf32>
    %129 = vector.shape_cast %128 : vector<16xf32> to vector<16x1xf32>
    %cst_65 = arith.constant 3.200000e+01 : f32
    %130 = vector.broadcast %cst_65 : f32 to vector<16x1xf32>
    %131 = arith.divf %129, %130 : vector<16x1xf32>
    %132 = vector.broadcast %131 : vector<16x1xf32> to vector<16x32xf32>
    %133 = arith.subf %123, %132 : vector<16x32xf32>
    %134 = arith.mulf %133, %133 : vector<16x32xf32>
    %cst_66 = arith.constant dense<0.000000e+00> : vector<16xf32>
    %135 = vector.multi_reduction <add>, %134, %cst_66 [1] : vector<16x32xf32> to vector<16xf32>
    %136 = vector.shape_cast %135 : vector<16xf32> to vector<16x1xf32>
    %cst_67 = arith.constant 3.200000e+01 : f32
    %137 = vector.broadcast %cst_67 : f32 to vector<16x1xf32>
    %138 = arith.divf %136, %137 : vector<16x1xf32>
    %139 = vector.broadcast %131 : vector<16x1xf32> to vector<16x32xf32>
    %140 = arith.subf %123, %139 : vector<16x32xf32>
    %cst_68 = arith.constant 9.99999974E-6 : f32
    %141 = vector.broadcast %cst_68 : f32 to vector<16x1xf32>
    %142 = arith.addf %138, %141 : vector<16x1xf32>
    %143 = math.rsqrt %142 : vector<16x1xf32>
    %144 = vector.broadcast %143 : vector<16x1xf32> to vector<16x32xf32>
    %145 = arith.mulf %140, %144 : vector<16x32xf32>
    %146 = vector.shape_cast %125 : vector<32xf32> to vector<1x32xf32>
    %147 = vector.broadcast %146 : vector<1x32xf32> to vector<16x32xf32>
    %148 = arith.mulf %145, %147 : vector<16x32xf32>
    %149 = vector.shape_cast %127 : vector<32xf32> to vector<1x32xf32>
    %150 = vector.broadcast %149 : vector<1x32xf32> to vector<16x32xf32>
    %151 = arith.addf %148, %150 : vector<16x32xf32>
    %152 = vector.shape_cast %151 : vector<16x32xf32> to vector<1x16x32xf32>
    %153 = vector.shape_cast %152 : vector<1x16x32xf32> to vector<1x16x32xf32>
    %154 = vector.broadcast %153 : vector<1x16x32xf32> to vector<4x16x32xf32>
    %c1_69 = arith.constant 1 : index
    %c0_70 = arith.constant 0 : index
    %c0_71 = arith.constant 0 : index
    %c0_72 = arith.constant 0 : index
    %155 = vector.load %arg4[%c1_69, %c0_70, %c0_71, %c0_72] : memref<2x4x32x8xf32, #tpu.memory_space<vmem>>, vector<1x4x32x8xf32>
    %156 = vector.shape_cast %155 : vector<1x4x32x8xf32> to vector<4x32x8xf32>
    "tpu.trace_start"() <{level = 10 : i32, message = "hmd,hde->hme"}> : () -> ()
    %cst_73 = arith.constant dense<0.000000e+00> : vector<4x16x8xf32>
    %157 = tpu.matmul %154, %156, %cst_73 {dimension_numbers = #tpu.dot_dimension_numbers<[2], [1], [1], [2], [0, 0, 0, 1, 1, 2], [0], [0]>} : vector<4x16x32xf32>, vector<4x32x8xf32>, vector<4x16x8xf32> -> vector<4x16x8xf32>
    "tpu.trace_stop"() : () -> ()
    %c1_74 = arith.constant 1 : index
    %c0_75 = arith.constant 0 : index
    %c0_76 = arith.constant 0 : index
    %c0_77 = arith.constant 0 : index
    %158 = vector.load %arg5[%c1_74, %c0_75, %c0_76, %c0_77] : memref<2x4x32x8xf32, #tpu.memory_space<vmem>>, vector<1x4x32x8xf32>
    %159 = vector.shape_cast %158 : vector<1x4x32x8xf32> to vector<4x32x8xf32>
    "tpu.trace_start"() <{level = 10 : i32, message = "hmd,hde->hme"}> : () -> ()
    %cst_78 = arith.constant dense<0.000000e+00> : vector<4x16x8xf32>
    %160 = tpu.matmul %154, %159, %cst_78 {dimension_numbers = #tpu.dot_dimension_numbers<[2], [1], [1], [2], [0, 0, 0, 1, 1, 2], [0], [0]>} : vector<4x16x32xf32>, vector<4x32x8xf32>, vector<4x16x8xf32> -> vector<4x16x8xf32>
    "tpu.trace_stop"() : () -> ()
    %c1_79 = arith.constant 1 : index
    %c0_80 = arith.constant 0 : index
    %c0_81 = arith.constant 0 : index
    %c0_82 = arith.constant 0 : index
    %161 = vector.load %arg6[%c1_79, %c0_80, %c0_81, %c0_82] : memref<2x4x32x8xf32, #tpu.memory_space<vmem>>, vector<1x4x32x8xf32>
    %162 = vector.shape_cast %161 : vector<1x4x32x8xf32> to vector<4x32x8xf32>
    "tpu.trace_start"() <{level = 10 : i32, message = "hmd,hde->hme"}> : () -> ()
    %cst_83 = arith.constant dense<0.000000e+00> : vector<4x16x8xf32>
    %163 = tpu.matmul %154, %162, %cst_83 {dimension_numbers = #tpu.dot_dimension_numbers<[2], [1], [1], [2], [0, 0, 0, 1, 1, 2], [0], [0]>} : vector<4x16x32xf32>, vector<4x32x8xf32>, vector<4x16x8xf32> -> vector<4x16x8xf32>
    "tpu.trace_stop"() : () -> ()
    "tpu.trace_start"() <{level = 10 : i32, message = "hqe,hke->hqk"}> : () -> ()
    %cst_84 = arith.constant dense<0.000000e+00> : vector<4x16x16xf32>
    %164 = tpu.matmul %157, %160, %cst_84 {dimension_numbers = #tpu.dot_dimension_numbers<[2], [2], [1], [1], [0, 0, 0, 1, 1, 1], [0], [0]>} : vector<4x16x8xf32>, vector<4x16x8xf32>, vector<4x16x16xf32> -> vector<4x16x16xf32>
    "tpu.trace_stop"() : () -> ()
    %cst_85 = arith.constant 0.353553385 : f32
    %165 = vector.broadcast %cst_85 : f32 to vector<4x16x16xf32>
    %166 = arith.mulf %164, %165 : vector<4x16x16xf32>
    %167 = vector.shape_cast %10 : vector<16x16xf32> to vector<1x16x16xf32>
    %168 = vector.broadcast %167 : vector<1x16x16xf32> to vector<4x16x16xf32>
    %169 = arith.addf %166, %168 : vector<4x16x16xf32>
    %cst_86 = arith.constant dense<0xFF800000> : vector<4x16xf32>
    %170 = vector.multi_reduction <maximumf>, %169, %cst_86 [2] : vector<4x16x16xf32> to vector<4x16xf32>
    %171 = vector.shape_cast %170 : vector<4x16xf32> to vector<4x16x1xf32>
    %172 = vector.broadcast %171 : vector<4x16x1xf32> to vector<4x16x16xf32>
    %173 = arith.subf %169, %172 : vector<4x16x16xf32>
    %174 = math.exp %173 : vector<4x16x16xf32>
    %cst_87 = arith.constant dense<0.000000e+00> : vector<4x16xf32>
    %175 = vector.multi_reduction <add>, %174, %cst_87 [2] : vector<4x16x16xf32> to vector<4x16xf32>
    %176 = vector.shape_cast %175 : vector<4x16xf32> to vector<4x16x1xf32>
    %177 = tpu.reciprocal %176 {approx = true} : vector<4x16x1xf32> -> vector<4x16x1xf32>
    %178 = vector.broadcast %177 : vector<4x16x1xf32> to vector<4x16x16xf32>
    %179 = arith.mulf %174, %178 : vector<4x16x16xf32>
    "tpu.trace_start"() <{level = 10 : i32, message = "hqk,hke->hqe"}> : () -> ()
    %cst_88 = arith.constant dense<0.000000e+00> : vector<4x16x8xf32>
    %180 = tpu.matmul %179, %163, %cst_88 {dimension_numbers = #tpu.dot_dimension_numbers<[2], [1], [1], [2], [0, 0, 0, 1, 1, 2], [0], [0]>} : vector<4x16x16xf32>, vector<4x16x8xf32>, vector<4x16x8xf32> -> vector<4x16x8xf32>
    "tpu.trace_stop"() : () -> ()
    %c1_89 = arith.constant 1 : index
    %c0_90 = arith.constant 0 : index
    %c0_91 = arith.constant 0 : index
    %c0_92 = arith.constant 0 : index
    %181 = vector.load %arg7[%c1_89, %c0_90, %c0_91, %c0_92] : memref<2x4x8x32xf32, #tpu.memory_space<vmem>>, vector<1x4x8x32xf32>
    %182 = vector.shape_cast %181 : vector<1x4x8x32xf32> to vector<4x8x32xf32>
    "tpu.trace_start"() <{level = 10 : i32, message = "hme,hed->hmd"}> : () -> ()
    %cst_93 = arith.constant dense<0.000000e+00> : vector<4x16x32xf32>
    %183 = tpu.matmul %180, %182, %cst_93 {dimension_numbers = #tpu.dot_dimension_numbers<[2], [1], [1], [2], [0, 0, 0, 1, 1, 2], [0], [0]>} : vector<4x16x8xf32>, vector<4x8x32xf32>, vector<4x16x32xf32> -> vector<4x16x32xf32>
    "tpu.trace_stop"() : () -> ()
    %cst_94 = arith.constant dense<0.000000e+00> : vector<16x32xf32>
    %184 = vector.multi_reduction <add>, %183, %cst_94 [0] : vector<4x16x32xf32> to vector<16x32xf32>
    %c1_95 = arith.constant 1 : index
    %c0_96 = arith.constant 0 : index
    %185 = vector.load %arg8[%c1_95, %c0_96] : memref<2x32xf32, #tpu.memory_space<vmem>>, vector<1x32xf32>
    %186 = vector.shape_cast %185 : vector<1x32xf32> to vector<32xf32>
    %187 = vector.shape_cast %186 : vector<32xf32> to vector<1x32xf32>
    %188 = vector.broadcast %187 : vector<1x32xf32> to vector<16x32xf32>
    %189 = arith.addf %184, %188 : vector<16x32xf32>
    %190 = arith.addf %123, %189 : vector<16x32xf32>
    %c1_97 = arith.constant 1 : index
    %c0_98 = arith.constant 0 : index
    %191 = vector.load %arg9[%c1_97, %c0_98] : memref<2x32xf32, #tpu.memory_space<vmem>>, vector<1x32xf32>
    %192 = vector.shape_cast %191 : vector<1x32xf32> to vector<32xf32>
    %c1_99 = arith.constant 1 : index
    %c0_100 = arith.constant 0 : index
    %193 = vector.load %arg10[%c1_99, %c0_100] : memref<2x32xf32, #tpu.memory_space<vmem>>, vector<1x32xf32>
    %194 = vector.shape_cast %193 : vector<1x32xf32> to vector<32xf32>
    %cst_101 = arith.constant dense<0.000000e+00> : vector<16xf32>
    %195 = vector.multi_reduction <add>, %190, %cst_101 [1] : vector<16x32xf32> to vector<16xf32>
    %196 = vector.shape_cast %195 : vector<16xf32> to vector<16x1xf32>
    %cst_102 = arith.constant 3.200000e+01 : f32
    %197 = vector.broadcast %cst_102 : f32 to vector<16x1xf32>
    %198 = arith.divf %196, %197 : vector<16x1xf32>
    %199 = vector.broadcast %198 : vector<16x1xf32> to vector<16x32xf32>
    %200 = arith.subf %190, %199 : vector<16x32xf32>
    %201 = arith.mulf %200, %200 : vector<16x32xf32>
    %cst_103 = arith.constant dense<0.000000e+00> : vector<16xf32>
    %202 = vector.multi_reduction <add>, %201, %cst_103 [1] : vector<16x32xf32> to vector<16xf32>
    %203 = vector.shape_cast %202 : vector<16xf32> to vector<16x1xf32>
    %cst_104 = arith.constant 3.200000e+01 : f32
    %204 = vector.broadcast %cst_104 : f32 to vector<16x1xf32>
    %205 = arith.divf %203, %204 : vector<16x1xf32>
    %206 = vector.broadcast %198 : vector<16x1xf32> to vector<16x32xf32>
    %207 = arith.subf %190, %206 : vector<16x32xf32>
    %cst_105 = arith.constant 9.99999974E-6 : f32
    %208 = vector.broadcast %cst_105 : f32 to vector<16x1xf32>
    %209 = arith.addf %205, %208 : vector<16x1xf32>
    %210 = math.rsqrt %209 : vector<16x1xf32>
    %211 = vector.broadcast %210 : vector<16x1xf32> to vector<16x32xf32>
    %212 = arith.mulf %207, %211 : vector<16x32xf32>
    %213 = vector.shape_cast %192 : vector<32xf32> to vector<1x32xf32>
    %214 = vector.broadcast %213 : vector<1x32xf32> to vector<16x32xf32>
    %215 = arith.mulf %212, %214 : vector<16x32xf32>
    %216 = vector.shape_cast %194 : vector<32xf32> to vector<1x32xf32>
    %217 = vector.broadcast %216 : vector<1x32xf32> to vector<16x32xf32>
    %218 = arith.addf %215, %217 : vector<16x32xf32>
    %c1_106 = arith.constant 1 : index
    %c0_107 = arith.constant 0 : index
    %c0_108 = arith.constant 0 : index
    %219 = vector.load %arg11[%c1_106, %c0_107, %c0_108] : memref<2x32x64xf32, #tpu.memory_space<vmem>>, vector<1x32x64xf32>
    %220 = vector.shape_cast %219 : vector<1x32x64xf32> to vector<32x64xf32>
    %cst_109 = arith.constant dense<0.000000e+00> : vector<16x64xf32>
    %221 = tpu.matmul %218, %220, %cst_109 {dimension_numbers = #tpu.dot_dimension_numbers<[1], [0], [0], [1], [0, 0, 1, 1], [], []>} : vector<16x32xf32>, vector<32x64xf32>, vector<16x64xf32> -> vector<16x64xf32>
    %c1_110 = arith.constant 1 : index
    %c0_111 = arith.constant 0 : index
    %222 = vector.load %arg12[%c1_110, %c0_111] : memref<2x64xf32, #tpu.memory_space<vmem>>, vector<1x64xf32>
    %223 = vector.shape_cast %222 : vector<1x64xf32> to vector<64xf32>
    %224 = vector.shape_cast %223 : vector<64xf32> to vector<1x64xf32>
    %225 = vector.broadcast %224 : vector<1x64xf32> to vector<16x64xf32>
    %226 = arith.addf %221, %225 : vector<16x64xf32>
    %227 = math.tanh %226 : vector<16x64xf32>
    %c1_112 = arith.constant 1 : index
    %c0_113 = arith.constant 0 : index
    %c0_114 = arith.constant 0 : index
    %228 = vector.load %arg13[%c1_112, %c0_113, %c0_114] : memref<2x64x32xf32, #tpu.memory_space<vmem>>, vector<1x64x32xf32>
    %229 = vector.shape_cast %228 : vector<1x64x32xf32> to vector<64x32xf32>
    %cst_115 = arith.constant dense<0.000000e+00> : vector<16x32xf32>
    %230 = tpu.matmul %227, %229, %cst_115 {dimension_numbers = #tpu.dot_dimension_numbers<[1], [0], [0], [1], [0, 0, 1, 1], [], []>} : vector<16x64xf32>, vector<64x32xf32>, vector<16x32xf32> -> vector<16x32xf32>
    %c1_116 = arith.constant 1 : index
    %c0_117 = arith.constant 0 : index
    %231 = vector.load %arg14[%c1_116, %c0_117] : memref<2x32xf32, #tpu.memory_space<vmem>>, vector<1x32xf32>
    %232 = vector.shape_cast %231 : vector<1x32xf32> to vector<32xf32>
    %233 = vector.shape_cast %232 : vector<32xf32> to vector<1x32xf32>
    %234 = vector.broadcast %233 : vector<1x32xf32> to vector<16x32xf32>
    %235 = arith.addf %230, %234 : vector<16x32xf32>
    %236 = arith.addf %190, %235 : vector<16x32xf32>
    %c0_118 = arith.constant 0 : index
    %c0_119 = arith.constant 0 : index
    %237 = vector.load %arg15[%c0_118, %c0_119] : memref<1x32xf32, #tpu.memory_space<vmem>>, vector<1x32xf32>
    %238 = vector.shape_cast %237 : vector<1x32xf32> to vector<32xf32>
    %c0_120 = arith.constant 0 : index
    %c0_121 = arith.constant 0 : index
    %239 = vector.load %arg16[%c0_120, %c0_121] : memref<1x32xf32, #tpu.memory_space<vmem>>, vector<1x32xf32>
    %240 = vector.shape_cast %239 : vector<1x32xf32> to vector<32xf32>
    %cst_122 = arith.constant dense<0.000000e+00> : vector<16xf32>
    %241 = vector.multi_reduction <add>, %236, %cst_122 [1] : vector<16x32xf32> to vector<16xf32>
    %242 = vector.shape_cast %241 : vector<16xf32> to vector<16x1xf32>
    %cst_123 = arith.constant 3.200000e+01 : f32
    %243 = vector.broadcast %cst_123 : f32 to vector<16x1xf32>
    %244 = arith.divf %242, %243 : vector<16x1xf32>
    %245 = vector.broadcast %244 : vector<16x1xf32> to vector<16x32xf32>
    %246 = arith.subf %236, %245 : vector<16x32xf32>
    %247 = arith.mulf %246, %246 : vector<16x32xf32>
    %cst_124 = arith.constant dense<0.000000e+00> : vector<16xf32>
    %248 = vector.multi_reduction <add>, %247, %cst_124 [1] : vector<16x32xf32> to vector<16xf32>
    %249 = vector.shape_cast %248 : vector<16xf32> to vector<16x1xf32>
    %cst_125 = arith.constant 3.200000e+01 : f32
    %250 = vector.broadcast %cst_125 : f32 to vector<16x1xf32>
    %251 = arith.divf %249, %250 : vector<16x1xf32>
    %252 = vector.broadcast %244 : vector<16x1xf32> to vector<16x32xf32>
    %253 = arith.subf %236, %252 : vector<16x32xf32>
    %cst_126 = arith.constant 9.99999974E-6 : f32
    %254 = vector.broadcast %cst_126 : f32 to vector<16x1xf32>
    %255 = arith.addf %251, %254 : vector<16x1xf32>
    %256 = math.rsqrt %255 : vector<16x1xf32>
    %257 = vector.broadcast %256 : vector<16x1xf32> to vector<16x32xf32>
    %258 = arith.mulf %253, %257 : vector<16x32xf32>
    %259 = vector.shape_cast %238 : vector<32xf32> to vector<1x32xf32>
    %260 = vector.broadcast %259 : vector<1x32xf32> to vector<16x32xf32>
    %261 = arith.mulf %258, %260 : vector<16x32xf32>
    %262 = vector.shape_cast %240 : vector<32xf32> to vector<1x32xf32>
    %263 = vector.broadcast %262 : vector<1x32xf32> to vector<16x32xf32>
    %264 = arith.addf %261, %263 : vector<16x32xf32>
    %c0_127 = arith.constant 0 : index
    %c0_128 = arith.constant 0 : index
    %265 = vector.load %arg17[%c0_127, %c0_128] : memref<16x32xf32, #tpu.memory_space<vmem>>, vector<16x32xf32>
    tpu.vector_store %arg17[%c0_127, %c0_128], %264 {strides = array<i32>} : memref<16x32xf32, #tpu.memory_space<vmem>>, vector<16x32xf32>,
    return
  }
  func.func @transform_0(%arg0: i32) -> (i32, i32) {
    %c0_i32 = arith.constant 0 : i32
    %c0_i32_0 = arith.constant 0 : i32
    return %arg0, %c0_i32 : i32, i32
  }
  func.func @transform_1(%arg0: i32) -> (i32, i32) {
    %c0_i32 = arith.constant 0 : i32
    %c0_i32_0 = arith.constant 0 : i32
    %c0_i32_1 = arith.constant 0 : i32
    return %c0_i32, %c0_i32_0 : i32, i32
  }
  func.func @transform_2(%arg0: i32) -> (i32, i32) {
    %c0_i32 = arith.constant 0 : i32
    %c0_i32_0 = arith.constant 0 : i32
    %c0_i32_1 = arith.constant 0 : i32
    return %c0_i32, %c0_i32_0 : i32, i32
  }
  func.func @transform_3(%arg0: i32) -> (i32, i32, i32, i32) {
    %c0_i32 = arith.constant 0 : i32
    %c0_i32_0 = arith.constant 0 : i32
    %c0_i32_1 = arith.constant 0 : i32
    %c0_i32_2 = arith.constant 0 : i32
    %c0_i32_3 = arith.constant 0 : i32
    return %c0_i32, %c0_i32_0, %c0_i32_1, %c0_i32_2 : i32, i32, i32, i32
  }
  func.func @transform_4(%arg0: i32) -> (i32, i32, i32, i32) {
    %c0_i32 = arith.constant 0 : i32
    %c0_i32_0 = arith.constant 0 : i32
    %c0_i32_1 = arith.constant 0 : i32
    %c0_i32_2 = arith.constant 0 : i32
    %c0_i32_3 = arith.constant 0 : i32
    return %c0_i32, %c0_i32_0, %c0_i32_1, %c0_i32_2 : i32, i32, i32, i32
  }
  func.func @transform_5(%arg0: i32) -> (i32, i32, i32, i32) {
    %c0_i32 = arith.constant 0 : i32
    %c0_i32_0 = arith.constant 0 : i32
    %c0_i32_1 = arith.constant 0 : i32
    %c0_i32_2 = arith.constant 0 : i32
    %c0_i32_3 = arith.constant 0 : i32
    return %c0_i32, %c0_i32_0, %c0_i32_1, %c0_i32_2 : i32, i32, i32, i32
  }
  func.func @transform_6(%arg0: i32) -> (i32, i32, i32, i32) {
    %c0_i32 = arith.constant 0 : i32
    %c0_i32_0 = arith.constant 0 : i32
    %c0_i32_1 = arith.constant 0 : i32
    %c0_i32_2 = arith.constant 0 : i32
    %c0_i32_3 = arith.constant 0 : i32
    return %c0_i32, %c0_i32_0, %c0_i32_1, %c0_i32_2 : i32, i32, i32, i32
  }
  func.func @transform_7(%arg0: i32) -> (i32, i32) {
    %c0_i32 = arith.constant 0 : i32
    %c0_i32_0 = arith.constant 0 : i32
    %c0_i32_1 = arith.constant 0 : i32
    return %c0_i32, %c0_i32_0 : i32, i32
  }
  func.func @transform_8(%arg0: i32) -> (i32, i32) {
    %c0_i32 = arith.constant 0 : i32
    %c0_i32_0 = arith.constant 0 : i32
    %c0_i32_1 = arith.constant 0 : i32
    return %c0_i32, %c0_i32_0 : i32, i32
  }
  func.func @transform_9(%arg0: i32) -> (i32, i32) {
    %c0_i32 = arith.constant 0 : i32
    %c0_i32_0 = arith.constant 0 : i32
    %c0_i32_1 = arith.constant 0 : i32
    return %c0_i32, %c0_i32_0 : i32, i32
  }
  func.func @transform_10(%arg0: i32) -> (i32, i32, i32) {
    %c0_i32 = arith.constant 0 : i32
    %c0_i32_0 = arith.constant 0 : i32
    %c0_i32_1 = arith.constant 0 : i32
    %c0_i32_2 = arith.constant 0 : i32
    return %c0_i32, %c0_i32_0, %c0_i32_1 : i32, i32, i32
  }
  func.func @transform_11(%arg0: i32) -> (i32, i32) {
    %c0_i32 = arith.constant 0 : i32
    %c0_i32_0 = arith.constant 0 : i32
    %c0_i32_1 = arith.constant 0 : i32
    return %c0_i32, %c0_i32_0 : i32, i32
  }
  func.func @transform_12(%arg0: i32) -> (i32, i32, i32) {
    %c0_i32 = arith.constant 0 : i32
    %c0_i32_0 = arith.constant 0 : i32
    %c0_i32_1 = arith.constant 0 : i32
    %c0_i32_2 = arith.constant 0 : i32
    return %c0_i32, %c0_i32_0, %c0_i32_1 : i32, i32, i32
  }
  func.func @transform_13(%arg0: i32) -> (i32, i32) {
    %c0_i32 = arith.constant 0 : i32
    %c0_i32_0 = arith.constant 0 : i32
    %c0_i32_1 = arith.constant 0 : i32
    return %c0_i32, %c0_i32_0 : i32, i32
  }
  func.func @transform_14(%arg0: i32) -> (i32, i32) {
    %c0_i32 = arith.constant 0 : i32
    %c0_i32_0 = arith.constant 0 : i32
    %c0_i32_1 = arith.constant 0 : i32
    return %c0_i32, %c0_i32_0 : i32, i32
  }
  func.func @transform_15(%arg0: i32) -> (i32, i32) {
    %c0_i32 = arith.constant 0 : i32
    %c0_i32_0 = arith.constant 0 : i32
    %c0_i32_1 = arith.constant 0 : i32
    return %c0_i32, %c0_i32_0 : i32, i32
  }
  func.func @transform_16(%arg0: i32) -> (i32, i32) {
    %c0_i32 = arith.constant 0 : i32
    %c0_i32_0 = arith.constant 0 : i32
    return %arg0, %c0_i32 : i32, i32
  }
}

</mosaic_0001>

<bundles_post_ra>
// kernel: _transformer_pallas_impl.1
= control target key start
LH: loop header
LB: loop body
LE: loop exit
PB: predicated region body
PF: predicated region fallthrough
CT: control target
= control target key end

     0   :  { %s7102_s0 = inlined_call_operand.vmem [shape: f32[16,32], index: 0, kind: input, shape index: {}]   ;;  %s7103_s1 = inlined_call_operand.vmem [shape: f32[2,32], index: 1, kind: input, shape index: {}]   ;;  %s7104_s2 = inlined_call_operand.vmem [shape: f32[2,32], index: 2, kind: input, shape index: {}]   ;;  %s7105_s3 = inlined_call_operand.vmem [shape: f32[2,4,32,8], index: 3, kind: input, shape index: {}]   ;;  %s7106_s4 = inlined_call_operand.vmem [shape: f32[2,4,32,8], index: 4, kind: input, shape index: {}]   ;;  %s7107_s5 = inlined_call_operand.vmem [shape: f32[2,4,32,8], index: 5, kind: input, shape index: {}]   ;;  %s7108_s6 = inlined_call_operand.vmem [shape: f32[2,4,8,32], index: 6, kind: input, shape index: {}]   ;;  %s7109_s7 = inlined_call_operand.vmem [shape: f32[2,32], index: 7, kind: input, shape index: {}]   ;;  %s7110_s8 = inlined_call_operand.vmem [shape: f32[2,32], index: 8, kind: input, shape index: {}]   ;;  %s7111_s9 = inlined_call_operand.vmem [shape: f32[2,32], index: 9, kind: input, shape index: {}]   ;;  %s7112_s10 = inlined_call_operand.vmem [shape: f32[2,32,64], index: 10, kind: input, shape index: {}]   ;;  %s7113_s11 = inlined_call_operand.vmem [shape: f32[2,64], index: 11, kind: input, shape index: {}]   ;;  %s7114_s12 = inlined_call_operand.vmem [shape: f32[2,64,32], index: 12, kind: input, shape index: {}]   ;;  %s7115_s13 = inlined_call_operand.vmem [shape: f32[2,32], index: 13, kind: input, shape index: {}]   ;;  %s7116_s14 = inlined_call_operand.vmem [shape: f32[1,32], index: 14, kind: input, shape index: {}]   ;;  %s7117_s15 = inlined_call_operand.vmem [shape: f32[1,32], index: 15, kind: input, shape index: {}]   ;;  %s7118_s16 = inlined_call_operand.hbm [shape: f32[16,32], index: 16, kind: output, shape index: {}]  }
   0x1   :  { %7120 = sst [smem:[#allocation5_spill]] %s7102_s0 }
   0x2   :  { %s7121_s23 = sld [smem:[#allocation5_spill]]  ;;  %vm70_vm0 = vcmask 261120  }
   0x8   :  { %v6311_v0 = vld [vmem:[%s7121_s23] sm:$0xff]  ;;  %v6316_v1 = vld [vmem:[%s7121_s23 + $0x8] sm:$0xff] }
   0x9   :  { %21 = vsyncpa [#allocation3], 0  ;;  %v71_v2 = vsel %vm70_vm0, %v6311_v0, 0.0  ;;  %v74_v3 = vsel %vm70_vm0, %v6316_v1, 0.0  ;;  %v110_v14 = vld [vmem:[%s7105_s3] sm:$0xff]  ;;  %v111_v15 = vld [vmem:[%s7105_s3 + $0x8] sm:$0xff] }
   0xa   :  { %72 = vadd.xlane.f32.xlu0 %v71_v2  ;;  %v114_v16 = vld [vmem:[%s7105_s3 + $0x20] sm:$0xff]  ;;  %v5779_v17 = vpack.c.bf16 %v111_v15, %v110_v14  ;;  %v115_v18 = vld [vmem:[%s7105_s3 + $0x28] sm:$0xff]  ;;  %v112_v20 = vld [vmem:[%s7105_s3 + $0x10] sm:$0xff]  ;;  %vm1064_vm1 = vcmask 64512   ;;  %vm1429_vm5 = vcmask 130048   ;;  %vm2338_vm6 = vcmask 523264  }
   0xb   :  { %v5787_v19 = vpack.c.bf16 %v115_v18, %v114_v16  ;;  %v113_v21 = vld [vmem:[%s7105_s3 + $0x18] sm:$0xff]  ;;  %v116_v22 = vld [vmem:[%s7105_s3 + $0x30] sm:$0xff]  ;;  %v118_v26 = vld [vmem:[%s7105_s3 + $0x40] sm:$0xff]  ;;  %s6220_s27 = smov [#allocation2]  }
   0xc   :  { %5780 = vmatprep.subr.bf16.mxu0 %v5779_v17  ;;  %v5783_v23 = vpack.c.bf16 %v113_v21, %v112_v20  ;;  %v117_v24 = vld [vmem:[%s7105_s3 + $0x38] sm:$0xff]  ;;  %v119_v27 = vld [vmem:[%s7105_s3 + $0x48] sm:$0xff]  ;;  %v122_v28 = vld [vmem:[%s7105_s3 + $0x60] sm:$0xff]  ;;  %s4828_s28 = sshll.u32 %s6220_s27, 4  ;;  %s4829_s28 = int_to_ptr.vmem [resolvable:$true] %s4828_s28 }
   0xd   :  { %5788 = vmatprep.subr.bf16.mxu1 %v5787_v19  ;;  %5782 = vmatpush3.bf16.msra.mxu0 %v5779_v17  ;;  %v5791_v25 = vpack.c.bf16 %v117_v24, %v116_v22  ;;  %v5795_v29 = vpack.c.bf16 %v119_v27, %v118_v26  ;;  %v123_v30 = vld [vmem:[%s7105_s3 + $0x68] sm:$0xff]  ;;  %v4839_v39 = vld [vmem:[%s7103_s1] ss:$0 sm:$0xff]  ;;  %v120_v46 = vld [vmem:[%s7105_s3 + $0x50] sm:$0xff]  ;;  %p6200_p1 = scmp.lt.s32.totalorder %s4829_s28, %s4829_s28 }
   0xe   :  { %75 = vadd.xlane.f32.xlu0 %v74_v3  ;;  %5790 = vmatpush3.bf16.msra.mxu1 %v5787_v19  ;;  %v5803_v31 = vpack.c.bf16 %v123_v30, %v122_v28  ;;  %v4840_v41 = vld [vmem:[%s7104_s2] ss:$0 sm:$0xff]  ;;  %v121_v48 = vld [vmem:[%s7105_s3 + $0x58] sm:$0xff]  ;;  %v124_v49 = vld [vmem:[%s7105_s3 + $0x70] sm:$0xff] }
   0xf   :  { %5784 = vmatprep.subr.bf16.mxu0 %v5783_v23  ;;  %5792 = vmatprep.subr.bf16.mxu1 %v5791_v25  ;;  %v125_v50 = vld [vmem:[%s7105_s3 + $0x78] sm:$0xff]  ;;  %v432_v52 = vld [vmem:[%s7106_s4] sm:$0xff]  ;;  %v5799_v53 = vpack.c.bf16 %v121_v48, %v120_v46  ;;  %v433_v55 = vld [vmem:[%s7106_s4 + $0x8] sm:$0xff] }
  0x10   :  { %v5807_v54 = vpack.c.bf16 %v125_v50, %v124_v49  ;;  %v436_v56 = vld [vmem:[%s7106_s4 + $0x20] sm:$0xff]  ;;  %v437_v57 = vld [vmem:[%s7106_s4 + $0x28] sm:$0xff]  ;;  %v5811_v58 = vpack.c.bf16 %v433_v55, %v432_v52  ;;  %v434_v60 = vld [vmem:[%s7106_s4 + $0x10] sm:$0xff] }
  0x11   :  { %5786 = vmatpush3.bf16.msra.mxu0 %v5783_v23  ;;  %v5819_v59 = vpack.c.bf16 %v437_v57, %v436_v56  ;;  %v435_v61 = vld [vmem:[%s7106_s4 + $0x18] sm:$0xff]  ;;  %v438_v62 = vld [vmem:[%s7106_s4 + $0x30] sm:$0xff]  ;;  %v748_v15 = vld [vmem:[%s7107_s5] sm:$0xff] }
  0x12   :  { %5794 = vmatpush3.bf16.msra.mxu1 %v5791_v25  ;;  %5796 = vmatprep.subr.bf16.mxu0 %v5795_v29  ;;  %v439_v63 = vld [vmem:[%s7106_s4 + $0x38] sm:$0xff]  ;;  %v5815_v2 = vpack.c.bf16 %v435_v61, %v434_v60  ;;  %v749_v16 = vld [vmem:[%s7107_s5 + $0x8] sm:$0xff]  ;;  %v752_v18 = vld [vmem:[%s7107_s5 + $0x20] sm:$0xff] }
  0x13   :  { %5804 = vmatprep.subr.bf16.mxu1 %v5803_v31  ;;  %v5823_v3 = vpack.c.bf16 %v439_v63, %v438_v62  ;;  %v753_v19 = vld [vmem:[%s7107_s5 + $0x28] sm:$0xff]  ;;  %v5843_v20 = vpack.c.bf16 %v749_v16, %v748_v15  ;;  %v750_v22 = vld [vmem:[%s7107_s5 + $0x10] sm:$0xff]  ;;  %v751_v23 = vld [vmem:[%s7107_s5 + $0x18] sm:$0xff] }
  0x14   :  { %v5851_v21 = vpack.c.bf16 %v753_v19, %v752_v18  ;;  %v754_v24 = vld [vmem:[%s7107_s5 + $0x30] sm:$0xff]  ;;  %v755_v25 = vld [vmem:[%s7107_s5 + $0x38] sm:$0xff]  ;;  %v5847_v26 = vpack.c.bf16 %v751_v23, %v750_v22  ;;  %v756_v27 = vld [vmem:[%s7107_s5 + $0x40] sm:$0xff]  ;;  %v6219_v19 = vmov -1e+30  }
  0x15   :  { %v757_v28 = vld [vmem:[%s7107_s5 + $0x48] sm:$0xff]  ;;  %v760_v30 = vld [vmem:[%s7107_s5 + $0x60] sm:$0xff]  ;;  %vm6532_vm2 = vmpackc.low %vm1064_vm1, %vm1064_vm1 }
  0x97   :  { %v73_v4 = vpop.xlane.xlu0 %72 }
  0x98   :  { %v78_v5 = vmul.f32 0.03125, %v73_v4  ;;  %v440_v4 = vld [vmem:[%s7106_s4 + $0x40] sm:$0xff] }
  0x9a   :  { %v80_v6 = vsub.f32 %v6311_v0, %v78_v5  ;;  %v441_v5 = vld [vmem:[%s7106_s4 + $0x48] sm:$0xff] }
  0x9b   :  { %v76_v7 = vpop.xlane.xlu0 %75 }
  0x9c   :  { %v79_v8 = vmul.f32 0.03125, %v76_v7  ;;  %v82_v9 = vmul.f32 %v80_v6, %v80_v6  ;;  %v445_v7 = vld [vmem:[%s7106_s4 + $0x68] sm:$0xff] }
  0x9e   :  { %v81_v10 = vsub.f32 %v6316_v1, %v79_v8  ;;  %v84_v11 = vsel %vm70_vm0, %v82_v9, 0.0  ;;  %v5827_v8 = vpack.c.bf16 %v441_v5, %v440_v4 }
  0x9f   :  { %85 = vadd.xlane.f32.xlu1 %v84_v11  ;;  %v443_v11 = vld [vmem:[%s7106_s4 + $0x58] sm:$0xff] }
  0xa0   :  { %v83_v12 = vmul.f32 %v81_v10, %v81_v10 }
  0xa2   :  { %v87_v13 = vsel %vm70_vm0, %v83_v12, 0.0  ;;  %v446_v12 = vld [vmem:[%s7106_s4 + $0x70] sm:$0xff] }
  0xa3   :  { %88 = vadd.xlane.f32.xlu1 %v87_v13  ;;  %v447_v13 = vld [vmem:[%s7106_s4 + $0x78] sm:$0xff] }
  0xa4   :  { %v5839_v17 = vpack.c.bf16 %v447_v13, %v446_v12 }
 0x12c   :  { %v86_v32 = vpop.xlane.xlu1 %85 }
 0x12d   :  { %v90_v33 = vmul.f32 0.03125, %v86_v32  ;;  %v5859_v32 = vpack.c.bf16 %v757_v28, %v756_v27 }
 0x12f   :  { %v92_v34 = vadd.f32 1e-05, %v90_v33 }
 0x130   :  { %v89_v35 = vpop.xlane.xlu1 %88 }
 0x131   :  { %6103 = vrsqrt.f32 %v92_v34  ;;  %v91_v36 = vmul.f32 0.03125, %v89_v35  ;;  %v758_v34 = vld [vmem:[%s7107_s5 + $0x50] sm:$0xff]  ;;  %v759_v35 = vld [vmem:[%s7107_s5 + $0x58] sm:$0xff] }
 0x133   :  { %v93_v37 = vadd.f32 1e-05, %v91_v36  ;;  %v762_v36 = vld [vmem:[%s7107_s5 + $0x70] sm:$0xff] }
 0x135   :  { %6105 = vrsqrt.f32 %v93_v37  ;;  %v763_v37 = vld [vmem:[%s7107_s5 + $0x78] sm:$0xff] }
 0x13b   :  { %v6104_v38 = vpop.eup %6103 }
 0x13c   :  { %v96_v40 = vmul.f32 %v6104_v38, %v80_v6  ;;  %v444_v6 = vld [vmem:[%s7106_s4 + $0x60] sm:$0xff]  ;;  %v5863_v38 = vpack.c.bf16 %v759_v35, %v758_v34 }
 0x13d   :  { %v5835_v9 = vpack.c.bf16 %v445_v7, %v444_v6 }
 0x13e   :  { %v102_v42 = vmul.f32 %v4839_v39, %v96_v40 }
 0x13f   :  { %v6106_v43 = vpop.eup %6105 }
 0x140   :  { %v6368_v44 = vadd.f32 %v4840_v41, %v102_v42  ;;  %v97_v45 = vmul.f32 %v6106_v43, %v81_v10  ;;  %v442_v10 = vld [vmem:[%s7106_s4 + $0x50] sm:$0xff] }
 0x141   :  { %v5831_v14 = vpack.c.bf16 %v443_v11, %v442_v10  ;;  %v56_v11 = vlaneseq }
 0x142   :  { %v103_v47 = vmul.f32 %v4839_v39, %v97_v45  ;;  %5311 = vmatprep.mubr.msk.f32.mxu0 %vm70_vm0, %v6368_v44  ;;  %5322 = vmatprep.mubr.msk.f32.mxu1 %vm70_vm0, %v6368_v44  ;;  %v5871_v39 = vpack.c.bf16 %v763_v37, %v762_v36 }
 0x143   :  { %v57_v12 = vshrl.u32 %v56_v11, 7 }
 0x144   :  { %v6386_v51 = vadd.f32 %v4840_v41, %v103_v47 }
 0x145   :  { %v58_v13 = vadd.s32 8, %v57_v12 }
 0x146   :  { %5312 = vmatmul.mubr.msk.f32.vlgmr.msra.gmra.mrb[0].mxu0 %vm70_vm0, %v6386_v51  ;;  %5323 = vmatmul.mubr.msk.f32.vlgmr.msra.gmra.mrb[0].mxu1 %vm70_vm0, %v6386_v51 }
 0x147   :  { %5798 = vmatpush3.bf16.msra.mxu0 %v5795_v29  ;;  %5806 = vmatpush3.bf16.msra.mxu1 %v5803_v31  ;;  %v5855_v29 = vpack.c.bf16 %v755_v25, %v754_v24  ;;  %v761_v31 = vld [vmem:[%s7107_s5 + $0x68] sm:$0xff]  ;;  %v62_v15 = vand.u32 4294967288, %v58_v13 }
 0x148   :  { %5333 = vmatprep.mubr.msk.f32.mxu0 %vm70_vm0, %v6368_v44  ;;  %5344 = vmatprep.mubr.msk.f32.mxu1 %vm70_vm0, %v6368_v44  ;;  %v5867_v33 = vpack.c.bf16 %v761_v31, %v760_v30 }
 0x149   :  { %5800 = vmatprep.subr.bf16.mxu0 %v5799_v53  ;;  %5808 = vmatprep.subr.bf16.mxu1 %v5807_v54 }
 0x14b   :  { %5802 = vmatpush3.bf16.msra.mxu0 %v5799_v53  ;;  %5810 = vmatpush3.bf16.msra.mxu1 %v5807_v54 }
 0x14c   :  { %5812 = vmatprep.subr.bf16.mxu0 %v5811_v58  ;;  %5820 = vmatprep.subr.bf16.mxu1 %v5819_v59 }
 0x14e   :  { %5334 = vmatmul.mubr.msk.f32.vlgmr.msra.gmra.mrb[2].mxu0 %vm70_vm0, %v6386_v51  ;;  %5345 = vmatmul.mubr.msk.f32.vlgmr.msra.gmra.mrb[2].mxu1 %vm70_vm0, %v6386_v51 }
 0x14f   :  { %5814 = vmatpush3.bf16.msra.mxu0 %v5811_v58  ;;  %5355 = vmatprep.mubr.msk.f32.mxu0 %vm70_vm0, %v6368_v44 }
 0x150   :  { %5822 = vmatpush3.bf16.msra.mxu1 %v5819_v59  ;;  %5366 = vmatprep.mubr.msk.f32.mxu1 %vm70_vm0, %v6368_v44 }
 0x151   :  { %5816 = vmatprep.subr.bf16.mxu0 %v5815_v2  ;;  %5824 = vmatprep.subr.bf16.mxu1 %v5823_v3 }
 0x153   :  { %5818 = vmatpush3.bf16.msra.mxu0 %v5815_v2 }
 0x154   :  { %5826 = vmatpush3.bf16.msra.mxu1 %v5823_v3  ;;  %5828 = vmatprep.subr.bf16.mxu0 %v5827_v8 }
 0x155   :  { %5836 = vmatprep.subr.bf16.mxu1 %v5835_v9 }
 0x156   :  { %5356 = vmatmul.mubr.msk.f32.vlgmr.msra.gmra.mrb[4].mxu0 %vm70_vm0, %v6386_v51 }
 0x157   :  { %5367 = vmatmul.mubr.msk.f32.vlgmr.msra.gmra.mrb[4].mxu1 %vm70_vm0, %v6386_v51  ;;  %5830 = vmatpush3.bf16.msra.mxu0 %v5827_v8 }
 0x158   :  { %5377 = vmatprep.mubr.msk.f32.mxu0 %vm70_vm0, %v6368_v44  ;;  %5838 = vmatpush3.bf16.msra.mxu1 %v5835_v9 }
 0x159   :  { %5388 = vmatprep.mubr.msk.f32.mxu1 %vm70_vm0, %v6368_v44  ;;  %5832 = vmatprep.subr.bf16.mxu0 %v5831_v14 }
 0x15a   :  { %5840 = vmatprep.subr.bf16.mxu1 %v5839_v17 }
 0x15b   :  { %5834 = vmatpush3.bf16.msra.mxu0 %v5831_v14  ;;  %v60_v14 = vand.u32 127, %v56_v11 }
 0x15c   :  { %5842 = vmatpush3.bf16.msra.mxu1 %v5839_v17  ;;  %5844 = vmatprep.subr.bf16.mxu0 %v5843_v20  ;;  %v61_v17 = vand.u32 4294967288, %v57_v12 }
 0x15d   :  { %5852 = vmatprep.subr.bf16.mxu1 %v5851_v21  ;;  %v63_v16 = vand.u32 4294967288, %v60_v14 }
 0x15e   :  { %5378 = vmatmul.mubr.msk.f32.vlgmr.msra.gmra.mrb[6].mxu0 %vm70_vm0, %v6386_v51 }
 0x15f   :  { %5389 = vmatmul.mubr.msk.f32.vlgmr.msra.gmra.mrb[6].mxu1 %vm70_vm0, %v6386_v51  ;;  %5846 = vmatpush3.bf16.msra.mxu0 %v5843_v20  ;;  %vm65_vm3 = vcmp.eq.s32.totalorder %v62_v15, %v63_v16  ;;  %vm64_vm4 = vcmp.eq.s32.totalorder %v61_v17, %v63_v16 }
 0x160   :  { %5399 = vmatprep.mubr.msk.f32.mxu0 %vm70_vm0, %v6368_v44  ;;  %5854 = vmatpush3.bf16.msra.mxu1 %v5851_v21  ;;  %v6563_v20 = vsel %vm65_vm3, 0.0, %v6219_v19  ;;  %v6565_v24 = vsel %vm64_vm4, 0.0, %v6219_v19 }
 0x161   :  { %5410 = vmatprep.mubr.msk.f32.mxu1 %vm70_vm0, %v6368_v44  ;;  %5848 = vmatprep.subr.bf16.mxu0 %v5847_v26 }
 0x162   :  { %5856 = vmatprep.subr.bf16.mxu1 %v5855_v29 }
 0x163   :  { %5850 = vmatpush3.bf16.msra.mxu0 %v5847_v26 }
 0x164   :  { %5858 = vmatpush3.bf16.msra.mxu1 %v5855_v29  ;;  %5860 = vmatprep.subr.bf16.mxu0 %v5859_v32 }
 0x165   :  { %5868 = vmatprep.subr.bf16.mxu1 %v5867_v33 }
 0x166   :  { %5400 = vmatmul.mubr.msk.f32.vlgmr.msra.gmra.mrb[8].mxu0 %vm70_vm0, %v6386_v51 }
 0x167   :  { %5411 = vmatmul.mubr.msk.f32.vlgmr.msra.gmra.mrb[8].mxu1 %vm70_vm0, %v6386_v51  ;;  %5862 = vmatpush3.bf16.msra.mxu0 %v5859_v32 }
 0x168   :  { %5421 = vmatprep.mubr.msk.f32.mxu0 %vm70_vm0, %v6368_v44  ;;  %5870 = vmatpush3.bf16.msra.mxu1 %v5867_v33 }
 0x169   :  { %5432 = vmatprep.mubr.msk.f32.mxu1 %vm70_vm0, %v6368_v44  ;;  %5864 = vmatprep.subr.bf16.mxu0 %v5863_v38 }
 0x16a   :  { %5872 = vmatprep.subr.bf16.mxu1 %v5871_v39 }
 0x16b   :  { %5866 = vmatpush3.bf16.msra.mxu0 %v5863_v38 }
 0x16c   :  { %5874 = vmatpush3.bf16.msra.mxu1 %v5871_v39 }
 0x16e   :  { %5422 = vmatmul.mubr.msk.f32.vlgmr.msra.gmra.mrb[10].mxu0 %vm70_vm0, %v6386_v51 }
 0x16f   :  { %5433 = vmatmul.mubr.msk.f32.vlgmr.msra.gmra.mrb[10].mxu1 %vm70_vm0, %v6386_v51 }
 0x219   :  { %v5313_v40 = vpop.f32.mrb[0].mxu0  ;;  %v5324_v41 = vpop.f32.mrb[0].mxu1 }
 0x21a   :  { %v198_v42 = vpop.f32.mrb[1].mxu0  ;;  %v273_v43 = vpop.f32.mrb[1].mxu1 }
 0x21b   :  { %5439 = vmatprep.mubr.msk.f32.mxu0 %vm1064_vm1, %v198_v42  ;;  %5446 = vmatprep.mubr.msk.f32.mxu1 %vm1064_vm1, %v273_v43 }
 0x221   :  { %v5335_v44 = vpop.f32.mrb[2].mxu0  ;;  %v5346_v45 = vpop.f32.mrb[2].mxu1 }
 0x222   :  { %v348_v46 = vpop.f32.mrb[3].mxu0  ;;  %v423_v47 = vpop.f32.mrb[3].mxu1 }
 0x229   :  { %v5357_v48 = vpop.f32.mrb[4].mxu0 }
 0x22a   :  { %v5368_v49 = vpop.f32.mrb[4].mxu1  ;;  %v514_v50 = vpop.f32.mrb[5].mxu0 }
 0x22b   :  { %v5875_v52 = vpack.c.bf16 %v5357_v48, %v514_v50  ;;  %v589_v53 = vpop.f32.mrb[5].mxu1 }
 0x22c   :  { %v5881_v54 = vpack.c.bf16 %v5368_v49, %v589_v53 }
 0x22d   :  { %5877 = vmatprep.subr.msk.bf16.mxu0 %vm6532_vm2, %v5875_v52 }
 0x22e   :  { %5883 = vmatprep.subr.msk.bf16.mxu1 %vm6532_vm2, %v5881_v54  ;;  %5880 = vmatpush3.bf16.xpose.msk.msra.mxu0 %vm6532_vm2, %v5875_v52 }
 0x22f   :  { %5886 = vmatpush3.bf16.xpose.msk.msra.mxu1 %vm6532_vm2, %v5881_v54 }
 0x231   :  { %v5379_v55 = vpop.f32.mrb[6].mxu0 }
 0x232   :  { %v5390_v56 = vpop.f32.mrb[6].mxu1  ;;  %v664_v57 = vpop.f32.mrb[7].mxu0 }
 0x233   :  { %v5887_v58 = vpack.c.bf16 %v5379_v55, %v664_v57  ;;  %v739_v59 = vpop.f32.mrb[7].mxu1 }
 0x234   :  { %v5893_v60 = vpack.c.bf16 %v5390_v56, %v739_v59 }
 0x235   :  { %5440 = vmatmul.mubr.msk.f32.vlgmr.msra.gmra.mrb[12].mxu0 %vm1064_vm1, %v5313_v40  ;;  %5889 = vmatprep.subr.msk.bf16.mxu0 %vm6532_vm2, %v5887_v58 }
 0x236   :  { %5447 = vmatmul.mubr.msk.f32.vlgmr.msra.gmra.mrb[12].mxu1 %vm1064_vm1, %v5324_v41  ;;  %5895 = vmatprep.subr.msk.bf16.mxu1 %vm6532_vm2, %v5893_v60 }
 0x237   :  { %5892 = vmatpush3.bf16.xpose.msk.msra.mxu0 %vm6532_vm2, %v5887_v58  ;;  %5453 = vmatprep.mubr.msk.f32.mxu0 %vm1064_vm1, %v348_v46 }
 0x238   :  { %5898 = vmatpush3.bf16.xpose.msk.msra.mxu1 %vm6532_vm2, %v5893_v60  ;;  %5460 = vmatprep.mubr.msk.f32.mxu1 %vm1064_vm1, %v423_v47 }
 0x239   :  { %v5401_v61 = vpop.f32.mrb[8].mxu0 }
 0x23a   :  { %v5412_v62 = vpop.f32.mrb[8].mxu1  ;;  %v830_v63 = vpop.f32.mrb[9].mxu0 }
 0x23b   :  { %v5899_v2 = vpack.c.bf16 %v5401_v61, %v830_v63  ;;  %v905_v3 = vpop.f32.mrb[9].mxu1 }
 0x23c   :  { %v6556_v4 = vpack.c.bf16 %v5412_v62, %v905_v3 }
 0x23d   :  { %5900 = vmatprep.subr.bf16.mxu0 %v5899_v2 }
 0x23e   :  { %5454 = vmatmul.mubr.msk.f32.vlgmr.msra.gmra.mrb[14].mxu0 %vm1064_vm1, %v5335_v44 }
 0x23f   :  { %5461 = vmatmul.mubr.msk.f32.vlgmr.msra.gmra.mrb[14].mxu1 %vm1064_vm1, %v5346_v45  ;;  %5902 = vmatpush3.bf16.msra.mxu0 %v5899_v2 }
 0x240   :  { %5904 = vmatprep.subr.bf16.mxu0 %v6556_v4 }
 0x241   :  { %v5423_v5 = vpop.f32.mrb[10].mxu0 }
 0x242   :  { %v5434_v6 = vpop.f32.mrb[10].mxu1  ;;  %v980_v7 = vpop.f32.mrb[11].mxu0 }
 0x243   :  { %v6561_v8 = vpack.c.bf16 %v5423_v5, %v980_v7  ;;  %v1055_v9 = vpop.f32.mrb[11].mxu1 }
 0x244   :  { %v5911_v10 = vpack.c.bf16 %v5434_v6, %v1055_v9 }
 0x246   :  { %5912 = vmatprep.subr.bf16.mxu1 %v5911_v10 }
 0x247   :  { %5914 = vmatpush3.bf16.msra.mxu1 %v5911_v10 }
 0x308   :  { %v5441_v18 = vpop.f32.mrb[12].mxu0 }
 0x309   :  { %v1414_v21 = vmul.f32 0.35355338, %v5441_v18  ;;  %v5448_v22 = vpop.f32.mrb[12].mxu1  ;;  %v1143_v23 = vpop.f32.mrb[13].mxu0 }
 0x30a   :  { %v1416_v25 = vmul.f32 0.35355338, %v5448_v22  ;;  %v1413_v26 = vmul.f32 0.35355338, %v1143_v23  ;;  %v1230_v27 = vpop.f32.mrb[13].mxu1 }
 0x30b   :  { %v1415_v28 = vmul.f32 0.35355338, %v1230_v27  ;;  %v1422_v29 = vadd.f32 %v1414_v21, %v6563_v20 }
 0x30c   :  { %v1421_v30 = vadd.f32 %v1413_v26, %v6565_v24  ;;  %v1424_v32 = vadd.f32 %v1416_v25, %v6563_v20 }
 0x30d   :  { %v1433_v31 = vsel %vm1429_vm5, %v1422_v29, -inf  ;;  %v1423_v34 = vadd.f32 %v1415_v28, %v6565_v24 }
 0x30e   :  { %1434 = vmax.xlane.f32.xlu1 %v1433_v31  ;;  %v1430_v33 = vsel %vm1429_vm5, %v1421_v30, -inf  ;;  %v1439_v36 = vsel %vm1429_vm5, %v1424_v32, -inf }
 0x30f   :  { %1431 = vmax.xlane.f32.xlu0 %v1430_v33  ;;  %v1436_v40 = vsel %vm1429_vm5, %v1423_v34, -inf }
 0x311   :  { %v5455_v35 = vpop.f32.mrb[14].mxu0 }
 0x312   :  { %v1418_v37 = vmul.f32 0.35355338, %v5455_v35  ;;  %v5462_v38 = vpop.f32.mrb[14].mxu1  ;;  %v1317_v39 = vpop.f32.mrb[15].mxu0  ;;  %1440 = vmax.xlane.f32.xlu1 %v1439_v36 }
 0x313   :  { %v1420_v41 = vmul.f32 0.35355338, %v5462_v38  ;;  %v1417_v42 = vmul.f32 0.35355338, %v1317_v39  ;;  %v1404_v43 = vpop.f32.mrb[15].mxu1  ;;  %1437 = vmax.xlane.f32.xlu0 %v1436_v40 }
 0x314   :  { %v1419_v44 = vmul.f32 0.35355338, %v1404_v43  ;;  %v1426_v45 = vadd.f32 %v1418_v37, %v6563_v20 }
 0x315   :  { %v1425_v46 = vadd.f32 %v1417_v42, %v6565_v24  ;;  %v1428_v48 = vadd.f32 %v1420_v41, %v6563_v20 }
 0x316   :  { %v1445_v47 = vsel %vm1429_vm5, %v1426_v45, -inf  ;;  %v1427_v50 = vadd.f32 %v1419_v44, %v6565_v24 }
 0x317   :  { %1446 = vmax.xlane.f32.xlu1 %v1445_v47  ;;  %v1442_v49 = vsel %vm1429_vm5, %v1425_v46, -inf  ;;  %v1451_v52 = vsel %vm1429_vm5, %v1428_v48, -inf }
 0x318   :  { %1443 = vmax.xlane.f32.xlu0 %v1442_v49  ;;  %v1448_v53 = vsel %vm1429_vm5, %v1427_v50, -inf }
 0x31b   :  { %1452 = vmax.xlane.f32.xlu1 %v1451_v52 }
 0x31c   :  { %1449 = vmax.xlane.f32.xlu0 %v1448_v53 }
 0x39b   :  { %v1435_v54 = vpop.xlane.xlu1 %1434 }
 0x39c   :  { %v1455_v55 = vsub.f32 %v1422_v29, %v1435_v54  ;;  %v1432_v56 = vpop.xlane.xlu0 %1431 }
 0x39d   :  { %v1454_v57 = vsub.f32 %v1421_v30, %v1432_v56 }
 0x39e   :  { %v1464_v58 = vmul.f32 1.442695, %v1455_v55 }
 0x39f   :  { %v1462_v59 = vmul.f32 1.442695, %v1454_v57  ;;  %v1441_v60 = vpop.xlane.xlu1 %1440 }
 0x3a0   :  { %6107 = vpow2.f32 %v1464_v58  ;;  %v1457_v61 = vsub.f32 %v1424_v32, %v1441_v60  ;;  %v1438_v62 = vpop.xlane.xlu0 %1437  ;;  %v1842_v60 = vld [vmem:[%s7108_s6] sm:$0xff] }
 0x3a1   :  { %6109 = vpow2.f32 %v1462_v59  ;;  %v1456_v63 = vsub.f32 %v1423_v34, %v1438_v62  ;;  %v1845_v62 = vld [vmem:[%s7108_s6 + $0x18] sm:$0xff] }
 0x3a2   :  { %v1468_v2 = vmul.f32 1.442695, %v1457_v61  ;;  %v1844_v61 = vld [vmem:[%s7108_s6 + $0x10] sm:$0xff] }
 0x3a3   :  { %v1466_v3 = vmul.f32 1.442695, %v1456_v63 }
 0x3a4   :  { %6111 = vpow2.f32 %v1468_v2  ;;  %v1447_v5 = vpop.xlane.xlu1 %1446 }
 0x3a5   :  { %6113 = vpow2.f32 %v1466_v3  ;;  %v1459_v6 = vsub.f32 %v1426_v45, %v1447_v5  ;;  %v1444_v7 = vpop.xlane.xlu0 %1443 }
 0x3a6   :  { %v1458_v9 = vsub.f32 %v1425_v46, %v1444_v7 }
 0x3a7   :  { %v1472_v10 = vmul.f32 1.442695, %v1459_v6 }
 0x3a8   :  { %v1470_v11 = vmul.f32 1.442695, %v1458_v9  ;;  %v1453_v12 = vpop.xlane.xlu1 %1452 }
 0x3a9   :  { %6115 = vpow2.f32 %v1472_v10  ;;  %v1461_v13 = vsub.f32 %v1428_v48, %v1453_v12  ;;  %v1450_v14 = vpop.xlane.xlu0 %1449 }
 0x3aa   :  { %v6108_v15 = vpop.eup %6107  ;;  %6117 = vpow2.f32 %v1470_v11  ;;  %v1460_v16 = vsub.f32 %v1427_v50, %v1450_v14 }
 0x3ab   :  { %v6110_v17 = vpop.eup %6109  ;;  %v1476_v18 = vmul.f32 1.442695, %v1461_v13  ;;  %v1481_v19 = vsel %vm1429_vm5, %v6108_v15, 0.0 }
 0x3ac   :  { %v1474_v21 = vmul.f32 1.442695, %v1460_v16  ;;  %1482 = vadd.xlane.f32.xlu1 %v1481_v19  ;;  %v1478_v22 = vsel %vm1429_vm5, %v6110_v17, 0.0 }
 0x3ad   :  { %6119 = vpow2.f32 %v1476_v18  ;;  %1479 = vadd.xlane.f32.xlu0 %v1478_v22 }
 0x3ae   :  { %v6112_v23 = vpop.eup %6111  ;;  %6121 = vpow2.f32 %v1474_v21 }
 0x3af   :  { %v6114_v25 = vpop.eup %6113  ;;  %v1487_v26 = vsel %vm1429_vm5, %v6112_v23, 0.0 }
 0x3b0   :  { %1488 = vadd.xlane.f32.xlu1 %v1487_v26  ;;  %v1484_v27 = vsel %vm1429_vm5, %v6114_v25, 0.0 }
 0x3b1   :  { %1485 = vadd.xlane.f32.xlu0 %v1484_v27 }
 0x3b3   :  { %v6116_v28 = vpop.eup %6115 }
 0x3b4   :  { %v6118_v29 = vpop.eup %6117  ;;  %v1493_v30 = vsel %vm1429_vm5, %v6116_v28, 0.0 }
 0x3b5   :  { %1494 = vadd.xlane.f32.xlu1 %v1493_v30  ;;  %v1490_v31 = vsel %vm1429_vm5, %v6118_v29, 0.0 }
 0x3b6   :  { %1491 = vadd.xlane.f32.xlu0 %v1490_v31  ;;  %v4897_v31 = vld [vmem:[%s7109_s7] ss:$0 sm:$0xff] }
 0x3b7   :  { %v6120_v32 = vpop.eup %6119 }
 0x3b8   :  { %v6122_v33 = vpop.eup %6121  ;;  %v1499_v34 = vsel %vm1429_vm5, %v6120_v32, 0.0 }
 0x3b9   :  { %1500 = vadd.xlane.f32.xlu1 %v1499_v34  ;;  %v1496_v35 = vsel %vm1429_vm5, %v6122_v33, 0.0 }
 0x3ba   :  { %1497 = vadd.xlane.f32.xlu0 %v1496_v35 }
 0x439   :  { %v1483_v36 = vpop.xlane.xlu1 %1482 }
 0x43a   :  { %6123 = vrcp.f32 %v1483_v36  ;;  %v1480_v37 = vpop.xlane.xlu0 %1479 }
 0x43b   :  { %6125 = vrcp.f32 %v1480_v37 }
 0x43d   :  { %v1489_v38 = vpop.xlane.xlu1 %1488 }
 0x43e   :  { %6127 = vrcp.f32 %v1489_v38  ;;  %v1486_v39 = vpop.xlane.xlu0 %1485 }
 0x43f   :  { %6129 = vrcp.f32 %v1486_v39 }
 0x442   :  { %v1495_v40 = vpop.xlane.xlu1 %1494 }
 0x443   :  { %6131 = vrcp.f32 %v1495_v40  ;;  %v1492_v41 = vpop.xlane.xlu0 %1491 }
 0x444   :  { %v6124_v42 = vpop.eup %6123  ;;  %6133 = vrcp.f32 %v1492_v41 }
 0x445   :  { %v6126_v43 = vpop.eup %6125  ;;  %v1511_v46 = vmul.f32 %v6124_v42, %v6108_v15 }
 0x446   :  { %v1501_v44 = vpop.xlane.xlu1 %1500  ;;  %v1510_v45 = vmul.f32 %v6126_v43, %v6110_v17 }
 0x447   :  { %6135 = vrcp.f32 %v1501_v44  ;;  %v1498_v47 = vpop.xlane.xlu0 %1497 }
 0x448   :  { %v6128_v48 = vpop.eup %6127  ;;  %6137 = vrcp.f32 %v1498_v47  ;;  %5467 = vmatprep.mubr.msk.f32.mxu0 %vm1429_vm5, %v1510_v45 }
 0x449   :  { %v6130_v49 = vpop.eup %6129  ;;  %5468 = vmatmul.mubr.msk.f32.vlgmr.msra.gmra.mrb[16].mxu0 %vm1429_vm5, %v1511_v46  ;;  %v1513_v52 = vmul.f32 %v6128_v48, %v6112_v23 }
 0x44a   :  { %5906 = vmatpush3.bf16.msra.mxu0 %v6556_v4  ;;  %v1512_v50 = vmul.f32 %v6130_v49, %v6114_v25 }
 0x44b   :  { %5908 = vmatprep.subr.bf16.mxu0 %v6561_v8 }
 0x44c   :  { %5474 = vmatprep.mubr.msk.f32.mxu0 %vm1429_vm5, %v1512_v50  ;;  %v2233_v50 = vld [vmem:[%s7112_s10] sm:$0xff] }
 0x44d   :  { %v6132_v53 = vpop.eup %6131  ;;  %5475 = vmatmul.mubr.msk.f32.vlgmr.msra.gmra.mrb[18].mxu0 %vm1429_vm5, %v1513_v52  ;;  %v2234_v52 = vld [vmem:[%s7112_s10 + $0x8] sm:$0xff] }
 0x44e   :  { %v6134_v54 = vpop.eup %6133  ;;  %5910 = vmatpush3.bf16.msra.mxu0 %v6561_v8  ;;  %v1515_v56 = vmul.f32 %v6132_v53, %v6116_v28  ;;  %v1843_v8 = vld [vmem:[%s7108_s6 + $0x8] sm:$0xff]  ;;  %v5915_v53 = vpack.c.bf16 %v2234_v52, %v2233_v50  ;;  %v4916_v52 = vld [vmem:[%s7105_s3 + $0xc0] sm:$0xff] }
 0x44f   :  { %v1514_v55 = vmul.f32 %v6134_v54, %v6118_v29  ;;  %5491 = vmatprep.subr.mxu0 %v1842_v60  ;;  %5496 = vmatprep.subr.mxu1 %v1843_v8  ;;  %v2235_v54 = vld [vmem:[%s7112_s10 + $0x10] sm:$0xff]  ;;  %v4909_v50 = vld [vmem:[%s7105_s3 + $0x88] sm:$0xff] }
 0x451   :  { %v6136_v57 = vpop.eup %6135  ;;  %5481 = vmatprep.mubr.msk.f32.mxu0 %vm1429_vm5, %v1514_v55  ;;  %v2236_v55 = vld [vmem:[%s7112_s10 + $0x18] sm:$0xff] }
 0x452   :  { %v6138_v58 = vpop.eup %6137  ;;  %5482 = vmatmul.mubr.msk.f32.vlgmr.msra.gmra.mrb[20].mxu0 %vm1429_vm5, %v1515_v56  ;;  %v1517_v59 = vmul.f32 %v6136_v57, %v6120_v32  ;;  %v5919_v56 = vpack.c.bf16 %v2236_v55, %v2235_v54  ;;  %v4917_v54 = vld [vmem:[%s7105_s3 + $0xc8] sm:$0xff] }
 0x453   :  { %v1516_v4 = vmul.f32 %v6138_v58, %v6122_v33  ;;  %5492 = vmatpush3.msra.mxu0 %v1842_v60  ;;  %v5955_v55 = vpack.c.bf16 %v4917_v54, %v4916_v52  ;;  %v4959_v52 = vld [vmem:[%s7107_s5 + $0x98] sm:$0xff]  ;;  %v4944_v54 = vld [vmem:[%s7106_s4 + $0xe0] sm:$0xff] }
 0x454   :  { %5501 = vmatprep.subr.mxu0 %v1844_v61 }
 0x455   :  { %5488 = vmatprep.mubr.msk.f32.mxu1 %vm1429_vm5, %v1516_v4 }
 0x456   :  { %5489 = vmatmul.mubr.msk.f32.vlgmr.msra.gmra.mrb[16].mxu1 %vm1429_vm5, %v1517_v59 }
 0x457   :  { %5497 = vmatpush3.msra.mxu1 %v1843_v8 }
 0x458   :  { %5506 = vmatprep.subr.mxu1 %v1845_v62 }
 0x51c   :  { %v5469_v63 = vpop.f32.mrb[16].mxu0 }
 0x51d   :  { %v1590_v2 = vpop.f32.mrb[17].mxu0 }
 0x51e   :  { %5493 = vmatprep.mubr.msk.f32.mxu0 %vm1064_vm1, %v1590_v2 }
 0x51f   :  { %5494 = vmatmul.mubr.msk.f32.vlgmr.msra.gmra.mrb[22].mxu0 %vm1064_vm1, %v5469_v63 }
 0x520   :  { %v5476_v3 = vpop.f32.mrb[18].mxu0  ;;  %5502 = vmatpush3.msra.mxu0 %v1844_v61 }
 0x521   :  { %v1671_v5 = vpop.f32.mrb[19].mxu0  ;;  %5916 = vmatprep.subr.bf16.mxu0 %v5915_v53 }
 0x522   :  { %5498 = vmatprep.mubr.msk.f32.mxu1 %vm1064_vm1, %v1671_v5  ;;  %v4899_v5 = vld [vmem:[%s7111_s9] ss:$0 sm:$0xff] }
 0x523   :  { %5499 = vmatmul.mubr.msk.f32.vlgmr.msra.gmra.mrb[18].mxu1 %vm1064_vm1, %v5476_v3 }
 0x524   :  { %5507 = vmatpush3.msra.mxu1 %v1845_v62  ;;  %v4898_v62 = vld [vmem:[%s7110_s8] ss:$0 sm:$0xff] }
 0x525   :  { %v5483_v6 = vpop.f32.mrb[20].mxu0 }
 0x526   :  { %v1752_v7 = vpop.f32.mrb[21].mxu0 }
 0x527   :  { %5503 = vmatprep.mubr.msk.f32.mxu0 %vm1064_vm1, %v1752_v7 }
 0x528   :  { %5504 = vmatmul.mubr.msk.f32.vlgmr.msra.gmra.mrb[24].mxu0 %vm1064_vm1, %v5483_v6 }
 0x529   :  { %v5490_v9 = vpop.f32.mrb[16].mxu1  ;;  %5918 = vmatpush3.bf16.msra.mxu0 %v5915_v53 }
 0x52a   :  { %v1833_v10 = vpop.f32.mrb[17].mxu1  ;;  %5920 = vmatprep.subr.bf16.mxu0 %v5919_v56 }
 0x52b   :  { %5508 = vmatprep.mubr.msk.f32.mxu1 %vm1064_vm1, %v1833_v10 }
 0x52c   :  { %5509 = vmatmul.mubr.msk.f32.vlgmr.msra.gmra.mrb[20].mxu1 %vm1064_vm1, %v5490_v9 }
 0x52d   :  { %5922 = vmatpush3.bf16.msra.mxu0 %v5919_v56  ;;  %v4910_v56 = vld [vmem:[%s7105_s3 + $0x90] sm:$0xff] }
 0x5f2   :  { %v5495_v11 = vpop.f32.mrb[22].mxu0 }
 0x5f3   :  { %v1918_v12 = vpop.f32.mrb[23].mxu0  ;;  %v2177_v14 = vsel %vm70_vm0, %v5495_v11, 0.0  ;;  %v2325_v11 = vld [vmem:[%s7114_s12] sm:$0xff] }
 0x5f4   :  { %v2170_v17 = vsel %vm70_vm0, %v1918_v12, 0.0  ;;  %v2326_v12 = vld [vmem:[%s7114_s12 + $0x8] sm:$0xff] }
 0x5f6   :  { %v5500_v13 = vpop.f32.mrb[18].mxu1 }
 0x5f7   :  { %v2178_v15 = vsel %vm70_vm0, %v5500_v13, 0.0  ;;  %v1999_v16 = vpop.f32.mrb[19].mxu1  ;;  %v5923_v13 = vpack.c.bf16 %v2326_v12, %v2325_v11 }
 0x5f8   :  { %v2179_v18 = vadd.f32 %v2178_v15, %v2177_v14  ;;  %v2171_v19 = vsel %vm70_vm0, %v1999_v16, 0.0  ;;  %v2327_v14 = vld [vmem:[%s7114_s12 + $0x10] sm:$0xff]  ;;  %v2328_v15 = vld [vmem:[%s7114_s12 + $0x18] sm:$0xff] }
 0x5f9   :  { %v2172_v21 = vadd.f32 %v2171_v19, %v2170_v17  ;;  %5924 = vmatprep.subr.bf16.mxu1 %v5923_v13  ;;  %v5927_v16 = vpack.c.bf16 %v2328_v15, %v2327_v14  ;;  %v2329_v17 = vld [vmem:[%s7114_s12 + $0x20] sm:$0xff]  ;;  %v2331_v19 = vld [vmem:[%s7114_s12 + $0x30] sm:$0xff] }
 0x5fa   :  { %5926 = vmatpush3.bf16.msra.mxu1 %v5923_v13  ;;  %v4906_v13 = vld [vmem:[%s7103_s1 + $0x1] ss:$0 sm:$0xff] }
 0x5fb   :  { %v5505_v22 = vpop.f32.mrb[24].mxu0  ;;  %5928 = vmatprep.subr.bf16.mxu1 %v5927_v16 }
 0x5fc   :  { %v2180_v23 = vsel %vm70_vm0, %v5505_v22, 0.0  ;;  %v2080_v25 = vpop.f32.mrb[25].mxu0  ;;  %v2332_v22 = vld [vmem:[%s7114_s12 + $0x38] sm:$0xff] }
 0x5fd   :  { %v2181_v26 = vadd.f32 %v2180_v23, %v2179_v18  ;;  %v2173_v27 = vsel %vm70_vm0, %v2080_v25, 0.0  ;;  %v2330_v18 = vld [vmem:[%s7114_s12 + $0x28] sm:$0xff]  ;;  %v5935_v23 = vpack.c.bf16 %v2332_v22, %v2331_v19  ;;  %v4900_v25 = vld [vmem:[%s7113_s11] ss:$0 sm:$0xff]  ;;  %v4915_v22 = vld [vmem:[%s7105_s3 + $0xb8] sm:$0xff] }
 0x5fe   :  { %v2174_v28 = vadd.f32 %v2173_v27, %v2172_v21  ;;  %v5931_v21 = vpack.c.bf16 %v2330_v18, %v2329_v17  ;;  %5930 = vmatpush3.bf16.msra.mxu1 %v5927_v16  ;;  %v4907_v17 = vld [vmem:[%s7104_s2 + $0x1] ss:$0 sm:$0xff] }
 0x5ff   :  { %v5510_v29 = vpop.f32.mrb[20].mxu1 }
 0x600   :  { %v2182_v30 = vsel %vm70_vm0, %v5510_v29, 0.0  ;;  %v2161_v32 = vpop.f32.mrb[21].mxu1  ;;  %5932 = vmatprep.subr.bf16.mxu1 %v5931_v21 }
 0x601   :  { %v2183_v33 = vadd.f32 %v2182_v30, %v2181_v26  ;;  %v2175_v34 = vsel %vm70_vm0, %v2161_v32, 0.0  ;;  %v4903_v32 = vld [vmem:[%s7115_s13] ss:$0 sm:$0xff] }
 0x602   :  { %v2176_v35 = vadd.f32 %v2175_v34, %v2174_v28  ;;  %5934 = vmatpush3.bf16.msra.mxu1 %v5931_v21  ;;  %v4914_v21 = vld [vmem:[%s7105_s3 + $0xb0] sm:$0xff] }
 0x603   :  { %v2190_v36 = vadd.f32 %v4897_v31, %v2183_v33  ;;  %5936 = vmatprep.subr.bf16.mxu1 %v5935_v23 }
 0x604   :  { %v2189_v37 = vadd.f32 %v4897_v31, %v2176_v35 }
 0x605   :  { %v6634_v38 = vadd.f32 %v2190_v36, %v6316_v1 }
 0x606   :  { %v6637_v39 = vadd.f32 %v2189_v37, %v6311_v0  ;;  %5938 = vmatpush3.bf16.msra.mxu1 %v5935_v23  ;;  %v4934_v23 = vld [vmem:[%s7106_s4 + $0x90] sm:$0xff] }
 0x607   :  { %v2198_v40 = vsel %vm70_vm0, %v6634_v38, 0.0  ;;  %5956 = vmatprep.subr.bf16.mxu1 %v5955_v55 }
 0x608   :  { %2199 = vadd.xlane.f32.xlu1 %v2198_v40  ;;  %v2195_v41 = vsel %vm70_vm0, %v6637_v39, 0.0 }
 0x609   :  { %2196 = vadd.xlane.f32.xlu0 %v2195_v41 }
 0x695   :  { %v2200_v42 = vpop.xlane.xlu1 %2199 }
 0x696   :  { %v2202_v43 = vmul.f32 0.03125, %v2200_v42  ;;  %v2197_v44 = vpop.xlane.xlu0 %2196 }
 0x697   :  { %v2201_v45 = vmul.f32 0.03125, %v2197_v44 }
 0x698   :  { %v2204_v46 = vsub.f32 %v6634_v38, %v2202_v43 }
 0x699   :  { %v2203_v1 = vsub.f32 %v6637_v39, %v2201_v45 }
 0x69a   :  { %v2206_v47 = vmul.f32 %v2204_v46, %v2204_v46 }
 0x69b   :  { %v2205_v48 = vmul.f32 %v2203_v1, %v2203_v1 }
 0x69c   :  { %v2210_v0 = vsel %vm70_vm0, %v2206_v47, 0.0 }
 0x69d   :  { %2211 = vadd.xlane.f32.xlu1 %v2210_v0  ;;  %v2207_v49 = vsel %vm70_vm0, %v2205_v48, 0.0 }
 0x69e   :  { %2208 = vadd.xlane.f32.xlu0 %v2207_v49  ;;  %v4908_v49 = vld [vmem:[%s7105_s3 + $0x80] sm:$0xff] }
 0x69f   :  { %v5939_v53 = vpack.c.bf16 %v4909_v50, %v4908_v49  ;;  %v4939_v49 = vld [vmem:[%s7106_s4 + $0xb8] sm:$0xff]  ;;  %v4958_v50 = vld [vmem:[%s7107_s5 + $0x90] sm:$0xff] }
 0x6a1   :  { %5940 = vmatprep.subr.bf16.mxu0 %v5939_v53 }
 0x72a   :  { %v2212_v57 = vpop.xlane.xlu1 %2211 }
 0x72b   :  { %v2214_v58 = vmul.f32 0.03125, %v2212_v57  ;;  %v2209_v4 = vpop.xlane.xlu0 %2208  ;;  %v4911_v57 = vld [vmem:[%s7105_s3 + $0x98] sm:$0xff] }
 0x72c   :  { %v2213_v59 = vmul.f32 0.03125, %v2209_v4  ;;  %v5943_v4 = vpack.c.bf16 %v4911_v57, %v4910_v56  ;;  %v6007_v56 = vpack.c.bf16 %v4959_v52, %v4958_v50  ;;  %v4964_v57 = vld [vmem:[%s7107_s5 + $0xc0] sm:$0xff] }
 0x72d   :  { %v2216_v60 = vadd.f32 1e-05, %v2214_v58  ;;  %v4918_v58 = vld [vmem:[%s7105_s3 + $0xd0] sm:$0xff] }
 0x72e   :  { %v2215_v8 = vadd.f32 1e-05, %v2213_v59  ;;  %v4919_v59 = vld [vmem:[%s7105_s3 + $0xd8] sm:$0xff] }
 0x72f   :  { %6139 = vrsqrt.f32 %v2216_v60  ;;  %v5959_v60 = vpack.c.bf16 %v4919_v59, %v4918_v58  ;;  %v4965_v58 = vld [vmem:[%s7107_s5 + $0xc8] sm:$0xff] }
 0x730   :  { %6141 = vrsqrt.f32 %v2215_v8  ;;  %v4912_v8 = vld [vmem:[%s7105_s3 + $0xa0] sm:$0xff]  ;;  %v6019_v59 = vpack.c.bf16 %v4965_v58, %v4964_v57 }
 0x739   :  { %v6140_v61 = vpop.eup %6139 }
 0x73a   :  { %v6142_v63 = vpop.eup %6141  ;;  %v2220_v2 = vmul.f32 %v6140_v61, %v2204_v46  ;;  %v4913_v61 = vld [vmem:[%s7105_s3 + $0xa8] sm:$0xff] }
 0x73b   :  { %v2219_v3 = vmul.f32 %v6142_v63, %v2203_v1  ;;  %v5947_v63 = vpack.c.bf16 %v4913_v61, %v4912_v8  ;;  %v4947_v8 = vld [vmem:[%s7106_s4 + $0xf8] sm:$0xff]  ;;  %v4966_v61 = vld [vmem:[%s7107_s5 + $0xd0] sm:$0xff] }
 0x73c   :  { %v2226_v6 = vmul.f32 %v4898_v62, %v2220_v2  ;;  %v4933_v2 = vld [vmem:[%s7106_s4 + $0x88] sm:$0xff] }
 0x73d   :  { %v2225_v7 = vmul.f32 %v4898_v62, %v2219_v3  ;;  %v4932_v62 = vld [vmem:[%s7106_s4 + $0x80] sm:$0xff] }
 0x73e   :  { %v2232_v10 = vadd.f32 %v4899_v5, %v2226_v6  ;;  %v5971_v3 = vpack.c.bf16 %v4933_v2, %v4932_v62  ;;  %v4967_v62 = vld [vmem:[%s7107_s5 + $0xd8] sm:$0xff]  ;;  %v4960_v2 = vld [vmem:[%s7107_s5 + $0xa0] sm:$0xff] }
 0x73f   :  { %v2231_v9 = vadd.f32 %v4899_v5, %v2225_v7 }
 0x741   :  { %5519 = vmatprep.mubr.msk.f32.mxu0 %vm70_vm0, %v2231_v9 }
 0x742   :  { %5520 = vmatmul.mubr.msk.f32.vlgmr.msra.gmra.mrb[26].mxu0 %vm70_vm0, %v2232_v10 }
 0x743   :  { %5942 = vmatpush3.bf16.msra.mxu0 %v5939_v53 }
 0x744   :  { %5944 = vmatprep.subr.bf16.mxu0 %v5943_v4 }
 0x747   :  { %5946 = vmatpush3.bf16.msra.mxu0 %v5943_v4 }
 0x748   :  { %5948 = vmatprep.subr.bf16.mxu0 %v5947_v63 }
 0x815   :  { %v5521_v26 = vpop.f32.mrb[26].mxu0 }
 0x816   :  { %v2320_v27 = vadd.f32 %v5521_v26, %v4900_v25  ;;  %v2314_v28 = vpop.f32.mrb[27].mxu0 }
 0x817   :  { %v2315_v29 = vadd.f32 %v4900_v25, %v2314_v28  ;;  %v4935_v25 = vld [vmem:[%s7106_s4 + $0x98] sm:$0xff]  ;;  %v4920_v28 = vld [vmem:[%s7105_s3 + $0xe0] sm:$0xff] }
 0x819   :  { %6143 = vtanh.f32 %v2315_v29  ;;  %v5951_v29 = vpack.c.bf16 %v4915_v22, %v4914_v21 }
 0x81a   :  { %6145 = vtanh.f32 %v2320_v27 }
 0x823   :  { %v6144_v30 = vpop.eup %6143 }
 0x824   :  { %v6146_v31 = vpop.eup %6145  ;;  %5538 = vmatprep.mubr.msk.f32.mxu1 %vm2338_vm6, %v6144_v30  ;;  %v5975_v30 = vpack.c.bf16 %v4935_v25, %v4934_v23 }
 0x825   :  { %5539 = vmatmul.mubr.msk.f32.vlgmr.msra.gmra.mrb[22].mxu1 %vm2338_vm6, %v6146_v31  ;;  %v4921_v31 = vld [vmem:[%s7105_s3 + $0xe8] sm:$0xff] }
 0x826   :  { %5958 = vmatpush3.bf16.msra.mxu1 %v5955_v55  ;;  %v4945_v55 = vld [vmem:[%s7106_s4 + $0xe8] sm:$0xff] }
 0x827   :  { %5960 = vmatprep.subr.bf16.mxu1 %v5959_v60  ;;  %v5995_v4 = vpack.c.bf16 %v4945_v55, %v4944_v54 }
 0x82a   :  { %5962 = vmatpush3.bf16.msra.mxu1 %v5959_v60  ;;  %v4946_v60 = vld [vmem:[%s7106_s4 + $0xf0] sm:$0xff] }
 0x82b   :  { %5972 = vmatprep.subr.bf16.mxu1 %v5971_v3 }
 0x8f8   :  { %v5540_v33 = vpop.f32.mrb[22].mxu1 }
 0x8f9   :  { %v2417_v34 = vadd.f32 %v5540_v33, %v4903_v32  ;;  %v2411_v35 = vpop.f32.mrb[23].mxu1  ;;  %v4941_v33 = vld [vmem:[%s7106_s4 + $0xc8] sm:$0xff] }
 0x8fa   :  { %v2412_v36 = vadd.f32 %v4903_v32, %v2411_v35  ;;  %v4940_v32 = vld [vmem:[%s7106_s4 + $0xc0] sm:$0xff] }
 0x8fb   :  { %v6700_v37 = vadd.f32 %v2417_v34, %v6634_v38  ;;  %v5963_v34 = vpack.c.bf16 %v4921_v31, %v4920_v28  ;;  %v5987_v35 = vpack.c.bf16 %v4941_v33, %v4940_v32 }
 0x8fc   :  { %v6703_v40 = vadd.f32 %v2412_v36, %v6637_v39  ;;  %v4922_v36 = vld [vmem:[%s7105_s3 + $0xf0] sm:$0xff] }
 0x8fd   :  { %v2427_v41 = vsel %vm70_vm0, %v6700_v37, 0.0 }
 0x8fe   :  { %2428 = vadd.xlane.f32.xlu1 %v2427_v41  ;;  %v2424_v42 = vsel %vm70_vm0, %v6703_v40, 0.0  ;;  %v4923_v41 = vld [vmem:[%s7105_s3 + $0xf8] sm:$0xff] }
 0x8ff   :  { %2425 = vadd.xlane.f32.xlu0 %v2424_v42  ;;  %v4942_v42 = vld [vmem:[%s7106_s4 + $0xd0] sm:$0xff] }
 0x98b   :  { %v2429_v43 = vpop.xlane.xlu1 %2428 }
 0x98c   :  { %v2431_v44 = vmul.f32 0.03125, %v2429_v43  ;;  %v2426_v45 = vpop.xlane.xlu0 %2425  ;;  %v4943_v43 = vld [vmem:[%s7106_s4 + $0xd8] sm:$0xff] }
 0x98d   :  { %v2430_v46 = vmul.f32 0.03125, %v2426_v45  ;;  %v5991_v45 = vpack.c.bf16 %v4943_v43, %v4942_v42 }
 0x98e   :  { %v2433_v1 = vsub.f32 %v6700_v37, %v2431_v44  ;;  %v5967_v44 = vpack.c.bf16 %v4923_v41, %v4922_v36 }
 0x98f   :  { %v2432_v38 = vsub.f32 %v6703_v40, %v2430_v46  ;;  %v4936_v46 = vld [vmem:[%s7106_s4 + $0xa0] sm:$0xff] }
 0x990   :  { %v2435_v47 = vmul.f32 %v2433_v1, %v2433_v1 }
 0x991   :  { %v2434_v48 = vmul.f32 %v2432_v38, %v2432_v38 }
 0x992   :  { %v2439_v39 = vsel %vm70_vm0, %v2435_v47, 0.0  ;;  %v4957_v47 = vld [vmem:[%s7107_s5 + $0x88] sm:$0xff] }
 0x993   :  { %2440 = vadd.xlane.f32.xlu1 %v2439_v39  ;;  %v2436_v0 = vsel %vm70_vm0, %v2434_v48, 0.0 }
 0x994   :  { %2437 = vadd.xlane.f32.xlu0 %v2436_v0  ;;  %v4938_v0 = vld [vmem:[%s7106_s4 + $0xb0] sm:$0xff] }
 0x995   :  { %v5983_v53 = vpack.c.bf16 %v4939_v49, %v4938_v0 }
 0xa20   :  { %v2441_v5 = vpop.xlane.xlu1 %2440 }
 0xa21   :  { %v2443_v6 = vmul.f32 0.03125, %v2441_v5  ;;  %v2438_v7 = vpop.xlane.xlu0 %2437  ;;  %v6023_v5 = vpack.c.bf16 %v4967_v62, %v4966_v61 }
 0xa22   :  { %v2442_v9 = vmul.f32 0.03125, %v2438_v7  ;;  %v4962_v7 = vld [vmem:[%s7107_s5 + $0xb0] sm:$0xff] }
 0xa23   :  { %v2445_v10 = vadd.f32 1e-05, %v2443_v6 }
 0xa24   :  { %v2444_v11 = vadd.f32 1e-05, %v2442_v9  ;;  %v4963_v9 = vld [vmem:[%s7107_s5 + $0xb8] sm:$0xff] }
 0xa25   :  { %6147 = vrsqrt.f32 %v2445_v10  ;;  %v6015_v10 = vpack.c.bf16 %v4963_v9, %v4962_v7 }
 0xa26   :  { %6149 = vrsqrt.f32 %v2444_v11  ;;  %v4968_v11 = vld [vmem:[%s7107_s5 + $0xe0] sm:$0xff] }
 0xa2f   :  { %v6148_v12 = vpop.eup %6147 }
 0xa30   :  { %v6150_v14 = vpop.eup %6149  ;;  %v2449_v15 = vmul.f32 %v6148_v12, %v2433_v1  ;;  %v4937_v1 = vld [vmem:[%s7106_s4 + $0xa8] sm:$0xff] }
 0xa31   :  { %v2448_v16 = vmul.f32 %v6150_v14, %v2432_v38  ;;  %v4956_v38 = vld [vmem:[%s7107_s5 + $0x80] sm:$0xff]  ;;  %v5979_v48 = vpack.c.bf16 %v4937_v1, %v4936_v46  ;;  %v4969_v12 = vld [vmem:[%s7107_s5 + $0xe8] sm:$0xff]  ;;  %v4970_v14 = vld [vmem:[%s7107_s5 + $0xf0] sm:$0xff] }
 0xa32   :  { %v2455_v18 = vmul.f32 %v4906_v13, %v2449_v15  ;;  %v6003_v39 = vpack.c.bf16 %v4957_v47, %v4956_v38  ;;  %v4971_v15 = vld [vmem:[%s7107_s5 + $0xf8] sm:$0xff] }
 0xa33   :  { %v2454_v19 = vmul.f32 %v4906_v13, %v2448_v16  ;;  %v6027_v13 = vpack.c.bf16 %v4969_v12, %v4968_v11  ;;  %v6031_v16 = vpack.c.bf16 %v4971_v15, %v4970_v14 }
 0xa34   :  { %v6769_v27 = vadd.f32 %v4907_v17, %v2455_v18 }
 0xa35   :  { %v6767_v26 = vadd.f32 %v4907_v17, %v2454_v19 }
 0xa37   :  { %5549 = vmatprep.mubr.msk.f32.mxu0 %vm70_vm0, %v6767_v26  ;;  %5571 = vmatprep.mubr.msk.f32.mxu1 %vm70_vm0, %v6767_v26 }
 0xa38   :  { %5550 = vmatmul.mubr.msk.f32.vlgmr.msra.gmra.mrb[28].mxu0 %vm70_vm0, %v6769_v27  ;;  %5572 = vmatmul.mubr.msk.f32.vlgmr.msra.gmra.mrb[24].mxu1 %vm70_vm0, %v6769_v27 }
 0xa39   :  { %5950 = vmatpush3.bf16.msra.mxu0 %v5947_v63  ;;  %5974 = vmatpush3.bf16.msra.mxu1 %v5971_v3  ;;  %v5999_v63 = vpack.c.bf16 %v4947_v8, %v4946_v60  ;;  %v4961_v3 = vld [vmem:[%s7107_s5 + $0xa8] sm:$0xff] }
 0xa3a   :  { %5560 = vmatprep.mubr.msk.f32.mxu0 %vm70_vm0, %v6767_v26  ;;  %5593 = vmatprep.mubr.msk.f32.mxu1 %vm70_vm0, %v6767_v26  ;;  %v6011_v6 = vpack.c.bf16 %v4961_v3, %v4960_v2 }
 0xa3b   :  { %5952 = vmatprep.subr.bf16.mxu0 %v5951_v29  ;;  %5976 = vmatprep.subr.bf16.mxu1 %v5975_v30 }
 0xa3d   :  { %5954 = vmatpush3.bf16.msra.mxu0 %v5951_v29  ;;  %5978 = vmatpush3.bf16.msra.mxu1 %v5975_v30 }
 0xa3e   :  { %5964 = vmatprep.subr.bf16.mxu0 %v5963_v34  ;;  %5988 = vmatprep.subr.bf16.mxu1 %v5987_v35 }
 0xa40   :  { %5561 = vmatmul.mubr.msk.f32.vlgmr.msra.gmra.mrb[30].mxu0 %vm70_vm0, %v6769_v27  ;;  %5594 = vmatmul.mubr.msk.f32.vlgmr.msra.gmra.mrb[26].mxu1 %vm70_vm0, %v6769_v27 }
 0xa41   :  { %5966 = vmatpush3.bf16.msra.mxu0 %v5963_v34  ;;  %5582 = vmatprep.mubr.msk.f32.mxu0 %vm70_vm0, %v6767_v26 }
 0xa42   :  { %5990 = vmatpush3.bf16.msra.mxu1 %v5987_v35  ;;  %5615 = vmatprep.mubr.msk.f32.mxu1 %vm70_vm0, %v6767_v26 }
 0xa43   :  { %5968 = vmatprep.subr.bf16.mxu0 %v5967_v44  ;;  %5992 = vmatprep.subr.bf16.mxu1 %v5991_v45 }
 0xa45   :  { %5970 = vmatpush3.bf16.msra.mxu0 %v5967_v44 }
 0xa46   :  { %5994 = vmatpush3.bf16.msra.mxu1 %v5991_v45  ;;  %5980 = vmatprep.subr.bf16.mxu0 %v5979_v48 }
 0xa47   :  { %6004 = vmatprep.subr.bf16.mxu1 %v6003_v39 }
 0xa48   :  { %5583 = vmatmul.mubr.msk.f32.vlgmr.msra.gmra.mrb[32].mxu0 %vm70_vm0, %v6769_v27 }
 0xa49   :  { %5616 = vmatmul.mubr.msk.f32.vlgmr.msra.gmra.mrb[28].mxu1 %vm70_vm0, %v6769_v27  ;;  %5982 = vmatpush3.bf16.msra.mxu0 %v5979_v48 }
 0xa4a   :  { %5604 = vmatprep.mubr.msk.f32.mxu0 %vm70_vm0, %v6767_v26  ;;  %6006 = vmatpush3.bf16.msra.mxu1 %v6003_v39 }
 0xa4b   :  { %5637 = vmatprep.mubr.msk.f32.mxu1 %vm70_vm0, %v6767_v26  ;;  %5984 = vmatprep.subr.bf16.mxu0 %v5983_v53 }
 0xa4c   :  { %6008 = vmatprep.subr.bf16.mxu1 %v6007_v56 }
 0xa4d   :  { %5986 = vmatpush3.bf16.msra.mxu0 %v5983_v53 }
 0xa4e   :  { %6010 = vmatpush3.bf16.msra.mxu1 %v6007_v56  ;;  %5996 = vmatprep.subr.bf16.mxu0 %v5995_v4 }
 0xa4f   :  { %6020 = vmatprep.subr.bf16.mxu1 %v6019_v59 }
 0xa50   :  { %5605 = vmatmul.mubr.msk.f32.vlgmr.msra.gmra.mrb[34].mxu0 %vm70_vm0, %v6769_v27 }
 0xa51   :  { %5638 = vmatmul.mubr.msk.f32.vlgmr.msra.gmra.mrb[30].mxu1 %vm70_vm0, %v6769_v27  ;;  %5998 = vmatpush3.bf16.msra.mxu0 %v5995_v4 }
 0xa52   :  { %5626 = vmatprep.mubr.msk.f32.mxu0 %vm70_vm0, %v6767_v26  ;;  %6022 = vmatpush3.bf16.msra.mxu1 %v6019_v59 }
 0xa53   :  { %5659 = vmatprep.mubr.msk.f32.mxu1 %vm70_vm0, %v6767_v26  ;;  %6000 = vmatprep.subr.bf16.mxu0 %v5999_v63 }
 0xa54   :  { %6024 = vmatprep.subr.bf16.mxu1 %v6023_v5 }
 0xa55   :  { %6002 = vmatpush3.bf16.msra.mxu0 %v5999_v63 }
 0xa56   :  { %6026 = vmatpush3.bf16.msra.mxu1 %v6023_v5  ;;  %6012 = vmatprep.subr.bf16.mxu0 %v6011_v6 }
 0xa58   :  { %5627 = vmatmul.mubr.msk.f32.vlgmr.msra.gmra.mrb[36].mxu0 %vm70_vm0, %v6769_v27 }
 0xa59   :  { %5660 = vmatmul.mubr.msk.f32.vlgmr.msra.gmra.mrb[32].mxu1 %vm70_vm0, %v6769_v27  ;;  %6014 = vmatpush3.bf16.msra.mxu0 %v6011_v6 }
 0xa5a   :  { %5648 = vmatprep.mubr.msk.f32.mxu0 %vm70_vm0, %v6767_v26  ;;  %6016 = vmatprep.subr.bf16.mxu0 %v6015_v10 }
 0xa5d   :  { %6018 = vmatpush3.bf16.msra.mxu0 %v6015_v10 }
 0xa5e   :  { %6028 = vmatprep.subr.bf16.mxu0 %v6027_v13 }
 0xa60   :  { %5649 = vmatmul.mubr.msk.f32.vlgmr.msra.gmra.mrb[38].mxu0 %vm70_vm0, %v6769_v27 }
 0xa61   :  { %6030 = vmatpush3.bf16.msra.mxu0 %v6027_v13  ;;  %5670 = vmatprep.mubr.msk.f32.mxu0 %vm70_vm0, %v6767_v26 }
 0xa62   :  { %6032 = vmatprep.subr.bf16.mxu0 %v6031_v16 }
 0xa65   :  { %6034 = vmatpush3.bf16.msra.mxu0 %v6031_v16 }
 0xa68   :  { %5671 = vmatmul.mubr.msk.f32.vlgmr.msra.gmra.mrb[40].mxu0 %vm70_vm0, %v6769_v27 }
 0xb0b   :  { %v5551_v17 = vpop.f32.mrb[28].mxu0  ;;  %v5573_v18 = vpop.f32.mrb[24].mxu1 }
 0xb0c   :  { %v2551_v19 = vpop.f32.mrb[29].mxu0  ;;  %v2701_v21 = vpop.f32.mrb[25].mxu1 }
 0xb0d   :  { %5677 = vmatprep.mubr.msk.f32.mxu1 %vm1064_vm1, %v2551_v19 }
 0xb13   :  { %v5562_v22 = vpop.f32.mrb[30].mxu0  ;;  %v5595_v23 = vpop.f32.mrb[26].mxu1 }
 0xb14   :  { %v2626_v25 = vpop.f32.mrb[31].mxu0  ;;  %v2868_v28 = vpop.f32.mrb[27].mxu1 }
 0xb15   :  { %v6035_v29 = vpack.c.bf16 %v5595_v23, %v2868_v28  ;;  %5684 = vmatprep.mubr.msk.f32.mxu0 %vm1064_vm1, %v2626_v25 }
 0xb17   :  { %6037 = vmatprep.subr.msk.bf16.mxu1 %vm6532_vm2, %v6035_v29 }
 0xb18   :  { %6040 = vmatpush3.bf16.xpose.msk.msra.mxu1 %vm6532_vm2, %v6035_v29 }
 0xb1b   :  { %v5584_v26 = vpop.f32.mrb[32].mxu0 }
 0xb1c   :  { %v5617_v27 = vpop.f32.mrb[28].mxu1  ;;  %v2776_v30 = vpop.f32.mrb[33].mxu0 }
 0xb1d   :  { %v3018_v31 = vpop.f32.mrb[29].mxu1 }
 0xb1e   :  { %v6047_v32 = vpack.c.bf16 %v5617_v27, %v3018_v31 }
 0xb1f   :  { %5678 = vmatmul.mubr.msk.f32.vlgmr.msra.gmra.mrb[34].mxu1 %vm1064_vm1, %v5551_v17 }
 0xb20   :  { %6049 = vmatprep.subr.msk.bf16.mxu1 %vm6532_vm2, %v6047_v32  ;;  %5691 = vmatprep.mubr.msk.f32.mxu1 %vm1064_vm1, %v2701_v21 }
 0xb21   :  { %6052 = vmatpush3.bf16.xpose.msk.msra.mxu1 %vm6532_vm2, %v6047_v32 }
 0xb23   :  { %v5606_v33 = vpop.f32.mrb[34].mxu0 }
 0xb24   :  { %v5639_v34 = vpop.f32.mrb[30].mxu1  ;;  %v2943_v35 = vpop.f32.mrb[35].mxu0 }
 0xb25   :  { %v6041_v36 = vpack.c.bf16 %v5606_v33, %v2943_v35  ;;  %v3185_v41 = vpop.f32.mrb[31].mxu1 }
 0xb26   :  { %v6059_v42 = vpack.c.bf16 %v5639_v34, %v3185_v41 }
 0xb27   :  { %6043 = vmatprep.subr.msk.bf16.mxu0 %vm6532_vm2, %v6041_v36 }
 0xb28   :  { %5692 = vmatmul.mubr.msk.f32.vlgmr.msra.gmra.mrb[36].mxu1 %vm1064_vm1, %v5573_v18  ;;  %6060 = vmatprep.subr.bf16.mxu1 %v6059_v42 }
 0xb29   :  { %6046 = vmatpush3.bf16.xpose.msk.msra.mxu0 %vm6532_vm2, %v6041_v36  ;;  %6062 = vmatpush3.bf16.msra.mxu1 %v6059_v42 }
 0xb2b   :  { %v5628_v43 = vpop.f32.mrb[36].mxu0 }
 0xb2c   :  { %v5661_v44 = vpop.f32.mrb[32].mxu1  ;;  %v3093_v45 = vpop.f32.mrb[37].mxu0 }
 0xb2d   :  { %v6053_v46 = vpack.c.bf16 %v5628_v43, %v3093_v45  ;;  %v3335_v1 = vpop.f32.mrb[33].mxu1 }
 0xb2e   :  { %v6067_v38 = vpack.c.bf16 %v5661_v44, %v3335_v1 }
 0xb2f   :  { %6055 = vmatprep.subr.msk.bf16.mxu0 %vm6532_vm2, %v6053_v46 }
 0xb30   :  { %5685 = vmatmul.mubr.msk.f32.vlgmr.msra.gmra.mrb[42].mxu0 %vm1064_vm1, %v5562_v22 }
 0xb31   :  { %6058 = vmatpush3.bf16.xpose.msk.msra.mxu0 %vm6532_vm2, %v6053_v46  ;;  %5698 = vmatprep.mubr.msk.f32.mxu0 %vm1064_vm1, %v2776_v30 }
 0xb32   :  { %6068 = vmatprep.subr.bf16.mxu0 %v6067_v38 }
 0xb33   :  { %v5650_v47 = vpop.f32.mrb[38].mxu0 }
 0xb34   :  { %v3260_v48 = vpop.f32.mrb[39].mxu0 }
 0xb35   :  { %v6938_v39 = vpack.c.bf16 %v5650_v47, %v3260_v48 }
 0xb37   :  { %6064 = vmatprep.subr.bf16.mxu1 %v6938_v39 }
 0xb38   :  { %5699 = vmatmul.mubr.msk.f32.vlgmr.msra.gmra.mrb[44].mxu0 %vm1064_vm1, %v5584_v26 }
 0xb39   :  { %6070 = vmatpush3.bf16.msra.mxu0 %v6067_v38 }
 0xb3b   :  { %v5672_v0 = vpop.f32.mrb[40].mxu0 }
 0xb3c   :  { %v3410_v49 = vpop.f32.mrb[41].mxu0 }
 0xb3d   :  { %v6942_v50 = vpack.c.bf16 %v5672_v0, %v3410_v49 }
 0xbf2   :  { %v5679_v52 = vpop.f32.mrb[34].mxu1 }
 0xbf3   :  { %v3768_v53 = vmul.f32 0.35355338, %v5679_v52  ;;  %v3497_v51 = vpop.f32.mrb[35].mxu1 }
 0xbf4   :  { %v3767_v54 = vmul.f32 0.35355338, %v3497_v51 }
 0xbf5   :  { %v3776_v55 = vadd.f32 %v3768_v53, %v6563_v20 }
 0xbf6   :  { %v3775_v56 = vadd.f32 %v3767_v54, %v6565_v24 }
 0xbf7   :  { %v3786_v57 = vsel %vm1429_vm5, %v3776_v55, -inf }
 0xbf8   :  { %3787 = vmax.xlane.f32.xlu1 %v3786_v57  ;;  %v3783_v58 = vsel %vm1429_vm5, %v3775_v56, -inf }
 0xbf9   :  { %3784 = vmax.xlane.f32.xlu0 %v3783_v58 }
 0xbfb   :  { %v5693_v4 = vpop.f32.mrb[36].mxu1 }
 0xbfc   :  { %v3772_v59 = vmul.f32 0.35355338, %v5693_v4  ;;  %v3671_v60 = vpop.f32.mrb[37].mxu1 }
 0xbfd   :  { %v3771_v8 = vmul.f32 0.35355338, %v3671_v60 }
 0xbfe   :  { %v3780_v61 = vadd.f32 %v3772_v59, %v6563_v20 }
 0xbff   :  { %v3779_v62 = vadd.f32 %v3771_v8, %v6565_v24 }
 0xc00   :  { %v3798_v63 = vsel %vm1429_vm5, %v3780_v61, -inf }
 0xc01   :  { %3799 = vmax.xlane.f32.xlu1 %v3798_v63  ;;  %v3795_v2 = vsel %vm1429_vm5, %v3779_v62, -inf }
 0xc02   :  { %3796 = vmax.xlane.f32.xlu0 %v3795_v2 }
 0xc03   :  { %v5686_v3 = vpop.f32.mrb[42].mxu0 }
 0xc04   :  { %v3770_v5 = vmul.f32 0.35355338, %v5686_v3  ;;  %v3584_v6 = vpop.f32.mrb[43].mxu0 }
 0xc05   :  { %v3769_v7 = vmul.f32 0.35355338, %v3584_v6 }
 0xc06   :  { %v3778_v9 = vadd.f32 %v3770_v5, %v6563_v20 }
 0xc07   :  { %v3777_v10 = vadd.f32 %v3769_v7, %v6565_v24 }
 0xc08   :  { %v3792_v11 = vsel %vm1429_vm5, %v3778_v9, -inf }
 0xc09   :  { %3793 = vmax.xlane.f32.xlu1 %v3792_v11  ;;  %v3789_v12 = vsel %vm1429_vm5, %v3777_v10, -inf }
 0xc0a   :  { %3790 = vmax.xlane.f32.xlu0 %v3789_v12 }
 0xc0b   :  { %v5700_v13 = vpop.f32.mrb[44].mxu0 }
 0xc0c   :  { %v3774_v14 = vmul.f32 0.35355338, %v5700_v13  ;;  %v3758_v15 = vpop.f32.mrb[45].mxu0 }
 0xc0d   :  { %v3773_v16 = vmul.f32 0.35355338, %v3758_v15 }
 0xc0e   :  { %v3782_v17 = vadd.f32 %v3774_v14, %v6563_v20 }
 0xc0f   :  { %v3781_v18 = vadd.f32 %v3773_v16, %v6565_v24 }
 0xc10   :  { %v3804_v19 = vsel %vm1429_vm5, %v3782_v17, -inf }
 0xc11   :  { %3805 = vmax.xlane.f32.xlu1 %v3804_v19  ;;  %v3801_v21 = vsel %vm1429_vm5, %v3781_v18, -inf }
 0xc12   :  { %3802 = vmax.xlane.f32.xlu0 %v3801_v21 }
 0xc85   :  { %v3788_v22 = vpop.xlane.xlu1 %3787 }
 0xc86   :  { %v3808_v23 = vsub.f32 %v3776_v55, %v3788_v22  ;;  %v3785_v25 = vpop.xlane.xlu0 %3784 }
 0xc87   :  { %v3807_v28 = vsub.f32 %v3775_v56, %v3785_v25 }
 0xc88   :  { %v3817_v29 = vmul.f32 1.442695, %v3808_v23 }
 0xc89   :  { %v3815_v26 = vmul.f32 1.442695, %v3807_v28  ;;  %v5004_v28 = vld [vmem:[%s7108_s6 + $0x20] sm:$0xff] }
 0xc8a   :  { %6151 = vpow2.f32 %v3817_v29  ;;  %5729 = vmatprep.subr.mxu0 %v5004_v28  ;;  %v5006_v29 = vld [vmem:[%s7108_s6 + $0x30] sm:$0xff] }
 0xc8b   :  { %6153 = vpow2.f32 %v3815_v26  ;;  %v5007_v26 = vld [vmem:[%s7108_s6 + $0x38] sm:$0xff] }
 0xc8e   :  { %v3800_v27 = vpop.xlane.xlu1 %3799 }
 0xc8f   :  { %v3812_v30 = vsub.f32 %v3780_v61, %v3800_v27  ;;  %v3797_v31 = vpop.xlane.xlu0 %3796 }
 0xc90   :  { %v3811_v20 = vsub.f32 %v3779_v62, %v3797_v31 }
 0xc91   :  { %v3825_v32 = vmul.f32 1.442695, %v3812_v30 }
 0xc92   :  { %v3823_v24 = vmul.f32 1.442695, %v3811_v20 }
 0xc93   :  { %6155 = vpow2.f32 %v3825_v32 }
 0xc94   :  { %v6152_v33 = vpop.eup %6151  ;;  %6157 = vpow2.f32 %v3823_v24 }
 0xc95   :  { %v6154_v34 = vpop.eup %6153  ;;  %v3834_v35 = vsel %vm1429_vm5, %v6152_v33, 0.0 }
 0xc96   :  { %v3794_v36 = vpop.xlane.xlu1 %3793  ;;  %3835 = vadd.xlane.f32.xlu1 %v3834_v35  ;;  %v3831_v41 = vsel %vm1429_vm5, %v6154_v34, 0.0 }
 0xc97   :  { %v3810_v42 = vsub.f32 %v3778_v9, %v3794_v36  ;;  %v3791_v43 = vpop.xlane.xlu0 %3790  ;;  %3832 = vadd.xlane.f32.xlu0 %v3831_v41 }
 0xc98   :  { %v3809_v44 = vsub.f32 %v3777_v10, %v3791_v43 }
 0xc99   :  { %v3821_v45 = vmul.f32 1.442695, %v3810_v42 }
 0xc9a   :  { %v3819_v46 = vmul.f32 1.442695, %v3809_v44 }
 0xc9b   :  { %6159 = vpow2.f32 %v3821_v45 }
 0xc9c   :  { %6161 = vpow2.f32 %v3819_v46 }
 0xc9d   :  { %v6156_v1 = vpop.eup %6155 }
 0xc9e   :  { %v6158_v38 = vpop.eup %6157  ;;  %v3806_v47 = vpop.xlane.xlu1 %3805  ;;  %v3846_v48 = vsel %vm1429_vm5, %v6156_v1, 0.0 }
 0xc9f   :  { %v3814_v0 = vsub.f32 %v3782_v17, %v3806_v47  ;;  %3847 = vadd.xlane.f32.xlu1 %v3846_v48  ;;  %v3803_v49 = vpop.xlane.xlu0 %3802  ;;  %v3843_v52 = vsel %vm1429_vm5, %v6158_v38, 0.0 }
 0xca0   :  { %v3813_v53 = vsub.f32 %v3781_v18, %v3803_v49  ;;  %3844 = vadd.xlane.f32.xlu0 %v3843_v52 }
 0xca1   :  { %v3829_v51 = vmul.f32 1.442695, %v3814_v0 }
 0xca2   :  { %v3827_v54 = vmul.f32 1.442695, %v3813_v53 }
 0xca3   :  { %6163 = vpow2.f32 %v3829_v51 }
 0xca4   :  { %6165 = vpow2.f32 %v3827_v54 }
 0xca5   :  { %v6160_v55 = vpop.eup %6159 }
 0xca6   :  { %v6162_v56 = vpop.eup %6161  ;;  %v3840_v57 = vsel %vm1429_vm5, %v6160_v55, 0.0 }
 0xca7   :  { %3841 = vadd.xlane.f32.xlu1 %v3840_v57  ;;  %v3837_v58 = vsel %vm1429_vm5, %v6162_v56, 0.0 }
 0xca8   :  { %3838 = vadd.xlane.f32.xlu0 %v3837_v58 }
 0xcad   :  { %v6164_v4 = vpop.eup %6163 }
 0xcae   :  { %v6166_v59 = vpop.eup %6165  ;;  %v3852_v60 = vsel %vm1429_vm5, %v6164_v4, 0.0 }
 0xcaf   :  { %3853 = vadd.xlane.f32.xlu1 %v3852_v60  ;;  %v3849_v8 = vsel %vm1429_vm5, %v6166_v59, 0.0 }
 0xcb0   :  { %3850 = vadd.xlane.f32.xlu0 %v3849_v8 }
 0xd23   :  { %v3836_v61 = vpop.xlane.xlu1 %3835 }
 0xd24   :  { %6167 = vrcp.f32 %v3836_v61  ;;  %v3833_v62 = vpop.xlane.xlu0 %3832 }
 0xd25   :  { %6169 = vrcp.f32 %v3833_v62 }
 0xd2c   :  { %v3848_v63 = vpop.xlane.xlu1 %3847 }
 0xd2d   :  { %6171 = vrcp.f32 %v3848_v63  ;;  %v3845_v2 = vpop.xlane.xlu0 %3844 }
 0xd2e   :  { %v6168_v3 = vpop.eup %6167  ;;  %6173 = vrcp.f32 %v3845_v2 }
 0xd2f   :  { %v6170_v5 = vpop.eup %6169  ;;  %v3864_v7 = vmul.f32 %v6168_v3, %v6152_v33 }
 0xd30   :  { %v3863_v6 = vmul.f32 %v6170_v5, %v6154_v34 }
 0xd32   :  { %5705 = vmatprep.mubr.msk.f32.mxu1 %vm1429_vm5, %v3863_v6 }
 0xd33   :  { %5706 = vmatmul.mubr.msk.f32.vlgmr.msra.gmra.mrb[38].mxu1 %vm1429_vm5, %v3864_v7 }
 0xd34   :  { %v3842_v9 = vpop.xlane.xlu1 %3841  ;;  %6066 = vmatpush3.bf16.msra.mxu1 %v6938_v39 }
 0xd35   :  { %6175 = vrcp.f32 %v3842_v9  ;;  %6072 = vmatprep.subr.bf16.mxu1 %v6942_v50  ;;  %v3839_v10 = vpop.xlane.xlu0 %3838 }
 0xd36   :  { %6177 = vrcp.f32 %v3839_v10 }
 0xd37   :  { %v6172_v11 = vpop.eup %6171 }
 0xd38   :  { %v6174_v12 = vpop.eup %6173  ;;  %v3868_v14 = vmul.f32 %v6172_v11, %v6156_v1 }
 0xd39   :  { %v3867_v13 = vmul.f32 %v6174_v12, %v6158_v38  ;;  %v5019_v12 = vld [vmem:[%s7112_s10 + $0x20] sm:$0xff] }
 0xd3b   :  { %5719 = vmatprep.mubr.msk.f32.mxu0 %vm1429_vm5, %v3867_v13  ;;  %v5020_v13 = vld [vmem:[%s7112_s10 + $0x28] sm:$0xff] }
 0xd3c   :  { %v3854_v15 = vpop.xlane.xlu1 %3853  ;;  %5720 = vmatmul.mubr.msk.f32.vlgmr.msra.gmra.mrb[46].mxu0 %vm1429_vm5, %v3868_v14  ;;  %v6075_v14 = vpack.c.bf16 %v5020_v13, %v5019_v12 }
 0xd3d   :  { %6179 = vrcp.f32 %v3854_v15  ;;  %v3851_v16 = vpop.xlane.xlu0 %3850  ;;  %5730 = vmatpush3.msra.mxu0 %v5004_v28  ;;  %v5021_v15 = vld [vmem:[%s7112_s10 + $0x30] sm:$0xff]  ;;  %v5017_v28 = vld [vmem:[%s7110_s8 + $0x1] ss:$0 sm:$0xff] }
 0xd3e   :  { %6181 = vrcp.f32 %v3851_v16  ;;  %5739 = vmatprep.subr.mxu0 %v5006_v29  ;;  %v5022_v16 = vld [vmem:[%s7112_s10 + $0x38] sm:$0xff]  ;;  %s6195_s10 = scalar_lea.vmem %s4829_s28, 256 }
 0xd3f   :  { %v6176_v17 = vpop.eup %6175  ;;  %p6196_p0 = scmp.ne.s32.totalorder %s4829_s28, %s6195_s10  ;;  %p6201_p2 = scmp.lt.s32.totalorder %s6195_s10, %s6195_s10 }
 0xd40   :  { %v6178_v18 = vpop.eup %6177  ;;  %v3866_v19 = vmul.f32 %v6176_v17, %v6160_v55  ;;  %v5016_v55 = vld [vmem:[%s7109_s7 + $0x1] ss:$0 sm:$0xff]  ;;  %v6079_v17 = vpack.c.bf16 %v5022_v16, %v5021_v15  ;;  %v5037_v15 = vld [vmem:[%s7116_s14] ss:$0 sm:$0xff] }
 0xd41   :  { %v3865_v39 = vmul.f32 %v6178_v18, %v6162_v56  ;;  %p6202_p3 = por %p6201_p2, %p6200_p1 }
 0xd43   :  { %5712 = vmatprep.mubr.msk.f32.mxu1 %vm1429_vm5, %v3865_v39  ;;  %p6203_p4 = pnand %p6202_p3, %p6196_p0 }
 0xd44   :  { %5713 = vmatmul.mubr.msk.f32.vlgmr.msra.gmra.mrb[40].mxu1 %vm1429_vm5, %v3866_v19 }
 0xd45   :  { %6074 = vmatpush3.bf16.msra.mxu1 %v6942_v50  ;;  %v5005_v50 = vld [vmem:[%s7108_s6 + $0x28] sm:$0xff] }
 0xd46   :  { %5734 = vmatprep.subr.mxu1 %v5005_v50 }
 0xd47   :  { %v6180_v21 = vpop.eup %6179 }
 0xd48   :  { %v6182_v22 = vpop.eup %6181  ;;  %v3870_v25 = vmul.f32 %v6180_v21, %v6164_v4 }
 0xd49   :  { %v3869_v23 = vmul.f32 %v6182_v22, %v6166_v59 }
 0xd4b   :  { %5726 = vmatprep.mubr.msk.f32.mxu1 %vm1429_vm5, %v3869_v23 }
 0xd4c   :  { %5727 = vmatmul.mubr.msk.f32.vlgmr.msra.gmra.mrb[42].mxu1 %vm1429_vm5, %v3870_v25 }
 0xd4d   :  { %5735 = vmatpush3.msra.mxu1 %v5005_v50 }
 0xd4e   :  { %5744 = vmatprep.subr.mxu1 %v5007_v26 }
 0xe06   :  { %v5707_v27 = vpop.f32.mrb[38].mxu1 }
 0xe07   :  { %v3943_v30 = vpop.f32.mrb[39].mxu1 }
 0xe08   :  { %5731 = vmatprep.mubr.msk.f32.mxu0 %vm1064_vm1, %v3943_v30 }
 0xe09   :  { %5732 = vmatmul.mubr.msk.f32.vlgmr.msra.gmra.mrb[48].mxu0 %vm1064_vm1, %v5707_v27  ;;  %v5018_v27 = vld [vmem:[%s7111_s9 + $0x1] ss:$0 sm:$0xff] }
 0xe0a   :  { %5740 = vmatpush3.msra.mxu0 %v5006_v29 }
 0xe0b   :  { %6076 = vmatprep.subr.bf16.mxu0 %v6075_v14 }
 0xe0f   :  { %v5721_v31 = vpop.f32.mrb[46].mxu0 }
 0xe10   :  { %v4105_v20 = vpop.f32.mrb[47].mxu0 }
 0xe11   :  { %5741 = vmatprep.mubr.msk.f32.mxu0 %vm1064_vm1, %v4105_v20 }
 0xe12   :  { %5742 = vmatmul.mubr.msk.f32.vlgmr.msra.gmra.mrb[50].mxu0 %vm1064_vm1, %v5721_v31 }
 0xe13   :  { %6078 = vmatpush3.bf16.msra.mxu0 %v6075_v14 }
 0xe14   :  { %6080 = vmatprep.subr.bf16.mxu0 %v6079_v17 }
 0xe17   :  { %v5714_v32 = vpop.f32.mrb[40].mxu1  ;;  %6082 = vmatpush3.bf16.msra.mxu0 %v6079_v17 }
 0xe18   :  { %v4024_v24 = vpop.f32.mrb[41].mxu1 }
 0xe19   :  { %5736 = vmatprep.mubr.msk.f32.mxu1 %vm1064_vm1, %v4024_v24  ;;  %v5026_v24 = vld [vmem:[%s7114_s12 + $0x40] sm:$0xff] }
 0xe1a   :  { %5737 = vmatmul.mubr.msk.f32.vlgmr.msra.gmra.mrb[44].mxu1 %vm1064_vm1, %v5714_v32 }
 0xe1b   :  { %5745 = vmatpush3.msra.mxu1 %v5007_v26 }
 0xe1f   :  { %v5728_v33 = vpop.f32.mrb[42].mxu1 }
 0xe20   :  { %v4186_v34 = vpop.f32.mrb[43].mxu1 }
 0xe21   :  { %5746 = vmatprep.mubr.msk.f32.mxu1 %vm1064_vm1, %v4186_v34 }
 0xe22   :  { %5747 = vmatmul.mubr.msk.f32.vlgmr.msra.gmra.mrb[46].mxu1 %vm1064_vm1, %v5728_v33  ;;  %v5027_v33 = vld [vmem:[%s7114_s12 + $0x48] sm:$0xff] }
 0xe23   :  { %v6083_v34 = vpack.c.bf16 %v5027_v33, %v5026_v24 }
 0xe25   :  { %6084 = vmatprep.subr.bf16.mxu1 %v6083_v34 }
 0xe26   :  { %6086 = vmatpush3.bf16.msra.mxu1 %v6083_v34 }
 0xedc   :  { %v5733_v35 = vpop.f32.mrb[48].mxu0 }
 0xedd   :  { %v4272_v36 = vpop.f32.mrb[49].mxu0  ;;  %v4531_v44 = vsel %vm70_vm0, %v5733_v35, 0.0  ;;  %v5028_v35 = vld [vmem:[%s7114_s12 + $0x50] sm:$0xff] }
 0xede   :  { %v4524_v1 = vsel %vm70_vm0, %v4272_v36, 0.0  ;;  %v5029_v36 = vld [vmem:[%s7114_s12 + $0x58] sm:$0xff] }
 0xee5   :  { %v5743_v41 = vpop.f32.mrb[50].mxu0 }
 0xee6   :  { %v4434_v42 = vpop.f32.mrb[51].mxu0  ;;  %v4534_v48 = vsel %vm70_vm0, %v5743_v41, 0.0  ;;  %v6087_v41 = vpack.c.bf16 %v5029_v36, %v5028_v35 }
 0xee7   :  { %v4527_v49 = vsel %vm70_vm0, %v4434_v42, 0.0  ;;  %v5030_v42 = vld [vmem:[%s7114_s12 + $0x60] sm:$0xff] }
 0xee8   :  { %6088 = vmatprep.subr.bf16.mxu1 %v6087_v41 }
 0xee9   :  { %6090 = vmatpush3.bf16.msra.mxu1 %v6087_v41 }
 0xeed   :  { %v5738_v43 = vpop.f32.mrb[44].mxu1 }
 0xeee   :  { %v4532_v45 = vsel %vm70_vm0, %v5738_v43, 0.0  ;;  %v4353_v46 = vpop.f32.mrb[45].mxu1  ;;  %v5031_v43 = vld [vmem:[%s7114_s12 + $0x68] sm:$0xff] }
 0xeef   :  { %v4533_v38 = vadd.f32 %v4532_v45, %v4531_v44  ;;  %v4525_v47 = vsel %vm70_vm0, %v4353_v46, 0.0  ;;  %v5032_v44 = vld [vmem:[%s7114_s12 + $0x70] sm:$0xff]  ;;  %v6091_v45 = vpack.c.bf16 %v5031_v43, %v5030_v42  ;;  %v5033_v46 = vld [vmem:[%s7114_s12 + $0x78] sm:$0xff] }
 0xef0   :  { %v4526_v0 = vadd.f32 %v4525_v47, %v4524_v1  ;;  %v6095_v1 = vpack.c.bf16 %v5033_v46, %v5032_v44 }
 0xef1   :  { %v4535_v52 = vadd.f32 %v4534_v48, %v4533_v38  ;;  %6092 = vmatprep.subr.bf16.mxu1 %v6091_v45  ;;  %v5023_v38 = vld [vmem:[%s7113_s11 + $0x1] ss:$0 sm:$0xff] }
 0xef2   :  { %v4528_v53 = vadd.f32 %v4527_v49, %v4526_v0  ;;  %6094 = vmatpush3.bf16.msra.mxu1 %v6091_v45 }
 0xef3   :  { %6096 = vmatprep.subr.bf16.mxu1 %v6095_v1 }
 0xef5   :  { %v5748_v51 = vpop.f32.mrb[46].mxu1 }
 0xef6   :  { %v4536_v54 = vsel %vm70_vm0, %v5748_v51, 0.0  ;;  %v4515_v56 = vpop.f32.mrb[47].mxu1  ;;  %6098 = vmatpush3.bf16.msra.mxu1 %v6095_v1  ;;  %v5034_v51 = vld [vmem:[%s7115_s13 + $0x1] ss:$0 sm:$0xff] }
 0xef7   :  { %v4537_v57 = vadd.f32 %v4536_v54, %v4535_v52  ;;  %v4529_v58 = vsel %vm70_vm0, %v4515_v56, 0.0 }
 0xef8   :  { %v4530_v4 = vadd.f32 %v4529_v58, %v4528_v53 }
 0xef9   :  { %v4544_v59 = vadd.f32 %v5016_v55, %v4537_v57 }
 0xefa   :  { %v4543_v60 = vadd.f32 %v5016_v55, %v4530_v4 }
 0xefb   :  { %v7011_v8 = vadd.f32 %v4544_v59, %v6700_v37 }
 0xefc   :  { %v7014_v61 = vadd.f32 %v4543_v60, %v6703_v40 }
 0xefd   :  { %v4552_v62 = vsel %vm70_vm0, %v7011_v8, 0.0 }
 0xefe   :  { %4553 = vadd.xlane.f32.xlu1 %v4552_v62  ;;  %v4549_v63 = vsel %vm70_vm0, %v7014_v61, 0.0 }
 0xeff   :  { %4550 = vadd.xlane.f32.xlu0 %v4549_v63 }
 0xf8b   :  { %v4554_v2 = vpop.xlane.xlu1 %4553 }
 0xf8c   :  { %v4556_v3 = vmul.f32 0.03125, %v4554_v2  ;;  %v4551_v5 = vpop.xlane.xlu0 %4550 }
 0xf8d   :  { %v4555_v6 = vmul.f32 0.03125, %v4551_v5 }
 0xf8e   :  { %v4558_v7 = vsub.f32 %v7011_v8, %v4556_v3 }
 0xf8f   :  { %v4557_v37 = vsub.f32 %v7014_v61, %v4555_v6 }
 0xf90   :  { %v4560_v9 = vmul.f32 %v4558_v7, %v4558_v7 }
 0xf91   :  { %v4559_v10 = vmul.f32 %v4557_v37, %v4557_v37 }
 0xf92   :  { %v4564_v40 = vsel %vm70_vm0, %v4560_v9, 0.0 }
 0xf93   :  { %4565 = vadd.xlane.f32.xlu1 %v4564_v40  ;;  %v4561_v11 = vsel %vm70_vm0, %v4559_v10, 0.0 }
 0xf94   :  { %4562 = vadd.xlane.f32.xlu0 %v4561_v11 }
0x1020   :  { %v4566_v18 = vpop.xlane.xlu1 %4565 }
0x1021   :  { %v4568_v39 = vmul.f32 0.03125, %v4566_v18  ;;  %v4563_v19 = vpop.xlane.xlu0 %4562 }
0x1022   :  { %v4567_v21 = vmul.f32 0.03125, %v4563_v19 }
0x1023   :  { %v4570_v22 = vadd.f32 1e-05, %v4568_v39  ;;  %v5038_v39 = vld [vmem:[%s7117_s15] ss:$0 sm:$0xff] }
0x1024   :  { %v4569_v23 = vadd.f32 1e-05, %v4567_v21 }
0x1025   :  { %6183 = vrsqrt.f32 %v4570_v22 }
0x1026   :  { %6185 = vrsqrt.f32 %v4569_v23 }
0x102f   :  { %v6184_v25 = vpop.eup %6183 }
0x1030   :  { %v6186_v29 = vpop.eup %6185  ;;  %v4574_v50 = vmul.f32 %v6184_v25, %v4558_v7 }
0x1031   :  { %v4573_v26 = vmul.f32 %v6186_v29, %v4557_v37 }
0x1032   :  { %v4580_v30 = vmul.f32 %v5017_v28, %v4574_v50 }
0x1033   :  { %v4579_v31 = vmul.f32 %v5017_v28, %v4573_v26 }
0x1034   :  { %v4586_v32 = vadd.f32 %v5018_v27, %v4580_v30 }
0x1035   :  { %v4585_v20 = vadd.f32 %v5018_v27, %v4579_v31 }
0x1037   :  { %5757 = vmatprep.mubr.msk.f32.mxu0 %vm70_vm0, %v4585_v20 }
0x1038   :  { %5758 = vmatmul.mubr.msk.f32.vlgmr.msra.gmra.mrb[52].mxu0 %vm70_vm0, %v4586_v32 }
0x110b   :  { %v5759_v47 = vpop.f32.mrb[52].mxu0 }
0x110c   :  { %v4675_v48 = vadd.f32 %v5759_v47, %v5023_v38  ;;  %v4669_v0 = vpop.f32.mrb[53].mxu0 }
0x110d   :  { %v4670_v49 = vadd.f32 %v5023_v38, %v4669_v0 }
0x110f   :  { %6187 = vtanh.f32 %v4670_v49 }
0x1110   :  { %6189 = vtanh.f32 %v4675_v48 }
0x1119   :  { %v6188_v52 = vpop.eup %6187 }
0x111a   :  { %v6190_v53 = vpop.eup %6189  ;;  %5776 = vmatprep.mubr.msk.f32.mxu1 %vm2338_vm6, %v6188_v52 }
0x111b   :  { %5777 = vmatmul.mubr.msk.f32.vlgmr.msra.gmra.mrb[48].mxu1 %vm2338_vm6, %v6190_v53 }
0x11ee   :  { %v5778_v54 = vpop.f32.mrb[48].mxu1 }
0x11ef   :  { %v4772_v55 = vadd.f32 %v5778_v54, %v5034_v51  ;;  %v4766_v56 = vpop.f32.mrb[49].mxu1 }
0x11f0   :  { %v4767_v57 = vadd.f32 %v5034_v51, %v4766_v56 }
0x11f1   :  { %v4776_v58 = vadd.f32 %v4772_v55, %v7011_v8 }
0x11f2   :  { %v4775_v4 = vadd.f32 %v4767_v57, %v7014_v61 }
0x11f3   :  { %v4782_v59 = vsel %vm70_vm0, %v4776_v58, 0.0 }
0x11f4   :  { %4783 = vadd.xlane.f32.xlu1 %v4782_v59  ;;  %v4779_v60 = vsel %vm70_vm0, %v4775_v4, 0.0 }
0x11f5   :  { %4780 = vadd.xlane.f32.xlu0 %v4779_v60 }
0x1281   :  { %v4784_v62 = vpop.xlane.xlu1 %4783 }
0x1282   :  { %v4786_v63 = vmul.f32 0.03125, %v4784_v62  ;;  %v4781_v2 = vpop.xlane.xlu0 %4780 }
0x1283   :  { %v4785_v3 = vmul.f32 0.03125, %v4781_v2 }
0x1284   :  { %v4788_v5 = vsub.f32 %v4776_v58, %v4786_v63 }
0x1285   :  { %v4787_v6 = vsub.f32 %v4775_v4, %v4785_v3 }
0x1286   :  { %v4790_v7 = vmul.f32 %v4788_v5, %v4788_v5 }
0x1287   :  { %v4789_v37 = vmul.f32 %v4787_v6, %v4787_v6 }
0x1288   :  { %v4794_v9 = vsel %vm70_vm0, %v4790_v7, 0.0 }
0x1289   :  { %4795 = vadd.xlane.f32.xlu1 %v4794_v9  ;;  %v4791_v8 = vsel %vm70_vm0, %v4789_v37, 0.0 }
0x128a   :  { %4792 = vadd.xlane.f32.xlu0 %v4791_v8 }
0x1316   :  { %v4796_v61 = vpop.xlane.xlu1 %4795 }
0x1317   :  { %v4798_v10 = vmul.f32 0.03125, %v4796_v61  ;;  %v4793_v40 = vpop.xlane.xlu0 %4792 }
0x1318   :  { %v4797_v11 = vmul.f32 0.03125, %v4793_v40 }
0x1319   :  { %v4800_v12 = vadd.f32 1e-05, %v4798_v10 }
0x131a   :  { %v4799_v13 = vadd.f32 1e-05, %v4797_v11 }
0x131b   :  { %6191 = vrsqrt.f32 %v4800_v12 }
0x131c   :  { %6193 = vrsqrt.f32 %v4799_v13 }
0x1325   :  { %v6192_v14 = vpop.eup %6191 }
0x1326   :  { %v6194_v16 = vpop.eup %6193  ;;  %v4804_v17 = vmul.f32 %v6192_v14, %v4788_v5 }
0x1327   :  { %v4803_v18 = vmul.f32 %v6194_v16, %v4787_v6 }
0x1328   :  { %v4812_v19 = vmul.f32 %v5037_v15, %v4804_v17 }
0x1329   :  { %v4811_v21 = vmul.f32 %v5037_v15, %v4803_v18 }
0x132a   :  { %v4820_v22 = vadd.f32 %v5038_v39, %v4812_v19 }
0x132b   :  { %v4819_v23 = vadd.f32 %v5038_v39, %v4811_v21 }
0x132c   :  { %4822 = vst.msk [vmem:[#allocation2 + $0x8] sm:$0xff] %vm70_vm0, %v4820_v22 }
0x132d   :  { %4821 = vst.msk [vmem:[#allocation2] sm:$0xff] %vm70_vm0, %v4819_v23 }
0x132e   :  { %6206 = shalt.err (!%p6203_p4)
}
0x132f   :  { %s6207_s29 = scalar_lea.hbm %s7118_s16, 256 }
0x1330   :  { %p6208_p5 = scmp.ne.s32.totalorder %s7118_s16, %s6207_s29  ;;  %p6211_p6 = scmp.lt.u32.totalorder %s6207_s29, %s7118_s16 }
0x1332   :  { %p6213_p7 = pnand %p6211_p6, %p6208_p5 }
0x1334   :  { %6216 = shalt.err (!%p6213_p7)
}
0x1335   :  { %s6221_s9 = smov 128   ;;  %s6222_s17 = smov 8  }
0x1336   :  { %4834 = dma.vmem_to_hbm [thread:$0]  %s4829_s28, 256, %s7118_s16, [#allocation3], %s6221_s9, %s6221_s9, %s6222_s17  }
0x1337   :  { %6217 = dma.done.wait [#allocation3], 256  }
0x1338   :  { %6218 = vsyncadd [#allocation3], 4294967040 }
0x1339   :  { %4838 = vsyncpa [#allocation3], 1 }

</bundles_post_ra>
